<compile_context>
chip_gen: v7x
topology: tpu7x:2x2x1
jax: 0.10.0
libtpu: 0.0.40
codegen_flags: <defaults>
</compile_context>

<pallas_src>
import jax
import jax.numpy as jnp
from jax.experimental import pallas as pl
from jax.experimental.pallas import tpu as pltpu


# ----------------------------------------------------------------------------
# Pallas kernel
# ----------------------------------------------------------------------------
def make_pnet_kernel(B, H, W):
    """Builds the per-step kernel body for static batch-block B and size (H, W)."""
    H1, W1 = H, W                                   # conv1, padding=1 ("same")
    Hp, Wp = (H1 - 3) // 2 + 1, (W1 - 3) // 2 + 1   # maxpool k=3, s=2, floor
    H2, W2 = Hp - 2, Wp - 2                         # conv2, valid 3x3
    H3, W3 = H2 - 2, W2 - 2                         # conv3, valid 3x3
    R1, R2, R3 = H1 * W1, H2 * W2, H3 * W3

    def prelu(v, a):
        return jnp.where(v >= 0, v, a * v)

    def im2col_bias(x, ho, wo):
        # 9 shifted 3x3 taps + a ones (bias) channel -> (ho*wo, 9*C + 1).
        cols = [x[kh:kh + ho, kw:kw + wo, :] for kh in range(3) for kw in range(3)]
        cols.append(jnp.ones((ho, wo, 1), jnp.float32))
        return jnp.concatenate(cols, axis=-1).reshape(ho * wo, -1)

    def maxpool3x3s2(x):
        # (H1, W1, C) -> (Hp, Wp, C), floor mode, entirely in vregs.
        mr = jnp.maximum(x[:-1], x[1:])                    # max(row k, row k+1)
        er = mr[:2 * Hp].reshape(Hp, 2, W1, -1)
        rmax = jnp.maximum(er[:, 0], er[:, 1])             # (Hp, W1, C)
        mc = jnp.maximum(rmax[:, :-1], rmax[:, 1:])        # max(col k, col k+1)
        ec = mc[:, :2 * Wp].reshape(Hp, Wp, 2, -1)
        return jnp.maximum(ec[:, :, 0], ec[:, :, 1])       # (Hp, Wp, C)

    def kernel(p1_ref,                    # (B, H1*W1, 32) conv1 patches (+bias/pad)
               w1_ref,                    # (32, 10)   w1 | b1 | zero-pad rows
               w2_ref,                    # (91, 16)   w2 | b2
               w3_ref,                    # (145, 32)  w3 | b3
               w4t_ref,                   # (5, 33)    fused heads^T | b4 column
               alpha_ref,                 # (3,) PReLU scalars, SMEM
               out_ref):                  # (B, 5, H3*W3) fused NCHW-style output
        a1, a2, a3 = alpha_ref[0], alpha_ref[1], alpha_ref[2]

        # ---- conv1 (+bias): one MXU matmul with M = B*H1*W1 -------------------
        p1 = p1_ref[...].reshape(B * R1, 32)
        h1 = prelu(jnp.dot(p1, w1_ref[...], preferred_element_type=jnp.float32), a1)

        # ---- per-image pool + conv2 im2col, one batched conv2 matmul ----------
        p2 = jnp.concatenate(
            [im2col_bias(maxpool3x3s2(h1[b * R1:(b + 1) * R1].reshape(H1, W1, 10)),
                         H2, W2)
             for b in range(B)], axis=0)                          # (B*R2, 91)
        h2 = prelu(jnp.dot(p2, w2_ref[...], preferred_element_type=jnp.float32), a2)

        # ---- per-image conv3 im2col, one batched conv3 matmul -----------------
        p3 = jnp.concatenate(
            [im2col_bias(h2[b * R2:(b + 1) * R2].reshape(H2, W2, 16), H3, W3)
             for b in range(B)], axis=0)                          # (B*R3, 145)
        h3 = prelu(jnp.dot(p3, w3_ref[...], preferred_element_type=jnp.float32), a3)

        # ---- fused heads, channels-leading (lane-dense), sigmoid on ch 0 only --
        h3a = jnp.concatenate([h3, jnp.ones((B * R3, 1), jnp.float32)], axis=1)
        headT = jax.lax.dot_general(                              # (5, B*R3)
            w4t_ref[...], h3a,
            dimension_numbers=(((1,), (1,)), ((), ())),
            preferred_element_type=jnp.float32)
        outT = jnp.concatenate([jax.nn.sigmoid(headT[0:1]), headT[1:]], axis=0)
        for b in range(B):
            out_ref[b] = outT[:, b * R3:(b + 1) * R3]

    return kernel, (Hp, Wp, H2, W2, H3, W3)


# ----------------------------------------------------------------------------
# Wrapper: layout conversion, conv1 im2col, bias folding, pallas_call plumbing
# ----------------------------------------------------------------------------
def pnet_forward(x_nchw, params):
    (w1, b1, a1, w2, b2, a2, w3, b3, a3, w41, b41, w42, b42) = params
    N, C, H, W = x_nchw.shape
    assert C == 3

    Hp, Wp = (H - 3) // 2 + 1, (W - 3) // 2 + 1
    H2, W2 = Hp - 2, Wp - 2
    H3, W3 = H2 - 2, W2 - 2
    if H3 < 1 or W3 < 1:
        raise ValueError(f"PNet requires spatial size >= 12, got {(H, W)}")
    R1, R3 = H * W, H3 * W3

    # Grid: >= 2 steps when N >= 2 (both TCs busy on v7x); remaining batch is
    # folded into each step's matmul M dimension.
    G = min(2, N)
    B = -(-N // G)
    G = -(-N // B)
    Npad = G * B

    # conv1 im2col in XLA: 27 taps + ones bias channel, padded to 32 lanes.
    x = jnp.transpose(x_nchw, (0, 2, 3, 1)).astype(jnp.float32)    # NCHW -> NHWC
    xp = jnp.pad(x, ((0, 0), (1, 1), (1, 1), (0, 0)))              # conv1 pad=1
    taps = [xp[:, kh:kh + H, kw:kw + W, :] for kh in range(3) for kw in range(3)]
    taps.append(jnp.ones((N, H, W, 1), jnp.float32))               # bias channel
    p1 = jnp.concatenate(taps, axis=-1)                            # (N, H, W, 28)
    p1 = jnp.pad(p1, ((0, Npad - N), (0, 0), (0, 0), (0, 4)))      # batch+lane pad
    p1 = p1.reshape(Npad, R1, 32)

    # Flattened weights with the bias folded in as an extra row / column.
    w1f = jnp.concatenate([w1.reshape(27, 10).astype(jnp.float32),
                           b1.astype(jnp.float32),
                           jnp.zeros((4, 10), jnp.float32)], axis=0)      # (32, 10)
    w2f = jnp.concatenate([w2.reshape(90, 16).astype(jnp.float32),
                           b2.astype(jnp.float32)], axis=0)               # (91, 16)
    w3f = jnp.concatenate([w3.reshape(144, 32).astype(jnp.float32),
                           b3.astype(jnp.float32)], axis=0)               # (145, 32)
    w4t = jnp.concatenate([jnp.concatenate([w41, w42], axis=1).T,
                           jnp.concatenate([b41, b42], axis=1).T],
                          axis=1).astype(jnp.float32)                     # (5, 33)
    alphas = jnp.concatenate([a1, a2, a3]).astype(jnp.float32)            # (3,)

    kernel, _ = make_pnet_kernel(B, H, W)

    out = pl.pallas_call(
        kernel,
        grid=(G,),
        out_shape=jax.ShapeDtypeStruct((Npad, 5, R3), jnp.float32),
        in_specs=[
            pl.BlockSpec((B, R1, 32), lambda g: (g, 0, 0)),       # conv1 patches
            pl.BlockSpec((32, 10), lambda g: (0, 0)),             # w1f (+b1)
            pl.BlockSpec((91, 16), lambda g: (0, 0)),             # w2f (+b2)
            pl.BlockSpec((145, 32), lambda g: (0, 0)),            # w3f (+b3)
            pl.BlockSpec((5, 33), lambda g: (0, 0)),              # w4t (+b4)
            pl.BlockSpec(memory_space=pltpu.MemorySpace.SMEM),    # PReLU alphas
        ],
        out_specs=pl.BlockSpec((B, 5, R3), lambda g: (g, 0, 0)),
        compiler_params=pltpu.CompilerParams(
            dimension_semantics=("parallel",)),
    )(p1, w1f, w2f, w3f, w4t, alphas)

    # Output is already (N, 5, H3*W3) in NCHW channel order: reshape + slice only.
    out = out[:N].reshape(N, 5, H3, W3)
    return out[:, 0:1], out[:, 1:5]


# ----------------------------------------------------------------------------
# Pure-JAX reference (for correctness check only)
# ----------------------------------------------------------------------------
def pnet_reference(x_nchw, params):
    (w1, b1, a1, w2, b2, a2, w3, b3, a3, w41, b41, w42, b42) = params

    def conv(x, w, b, padding):
        y = jax.lax.conv_general_dilated(
            x, w, (1, 1), padding,
            dimension_numbers=("NHWC", "HWIO", "NHWC"))
        return y + b.reshape(1, 1, 1, -1)

    def prelu(v, a):
        return jnp.where(v >= 0, v, a[0] * v)

    x = jnp.transpose(x_nchw, (0, 2, 3, 1)).astype(jnp.float32)
    h = prelu(conv(x, w1, b1, "SAME"), a1)
    h = jax.lax.reduce_window(h, -jnp.inf, jax.lax.max,
                              (1, 3, 3, 1), (1, 2, 2, 1), "VALID")
    h = prelu(conv(h, w2, b2, "VALID"), a2)
    h = prelu(conv(h, w3, b3, "VALID"), a3)
    cond = jax.nn.sigmoid(jnp.einsum("nhwc,cd->nhwd", h, w41) + b41.reshape(1, 1, 1, -1))
    off = jnp.einsum("nhwc,cd->nhwd", h, w42) + b42.reshape(1, 1, 1, -1)
    return jnp.transpose(cond, (0, 3, 1, 2)), jnp.transpose(off, (0, 3, 1, 2))


# ----------------------------------------------------------------------------
# Main
# ----------------------------------------------------------------------------
if __name__ == "__main__":
    key = jax.random.PRNGKey(0)
    ks = jax.random.split(key, 12)

    # Deterministic synthetic parameters (shapes implied by the PyTorch module).
    # Conv weights stored as HWIO; biases as (1, Cout); PReLU scalars init 0.25.
    w1 = jax.random.normal(ks[0], (3, 3, 3, 10), jnp.float32) * 0.1
    b1 = jax.random.normal(ks[1], (1, 10), jnp.float32) * 0.01
    a1 = jnp.full((1,), 0.25, jnp.float32)
    w2 = jax.random.normal(ks[2], (3, 3, 10, 16), jnp.float32) * 0.1
    b2 = jax.random.normal(ks[3], (1, 16), jnp.float32) * 0.01
    a2 = jnp.full((1,), 0.25, jnp.float32)
    w3 = jax.random.normal(ks[4], (3, 3, 16, 32), jnp.float32) * 0.1
    b3 = jax.random.normal(ks[5], (1, 32), jnp.float32) * 0.01
    a3 = jnp.full((1,), 0.25, jnp.float32)
    w41 = jax.random.normal(ks[6], (32, 1), jnp.float32) * 0.1
    b41 = jax.random.normal(ks[7], (1, 1), jnp.float32) * 0.01
    w42 = jax.random.normal(ks[8], (32, 4), jnp.float32) * 0.1
    b42 = jax.random.normal(ks[9], (1, 4), jnp.float32) * 0.01
    params = (w1, b1, a1, w2, b2, a2, w3, b3, a3, w41, b41, w42, b42)

    # Input in PyTorch NCHW convention: (batch=2, channels=3, 16, 16).
    x = jax.random.normal(ks[10], (2, 3, 16, 16), jnp.float32)

    cond, offset = pnet_forward(x, params)
    jax.block_until_ready((cond, offset))

    cond_ref, offset_ref = pnet_reference(x, params)
    assert cond.shape == (2, 1, 3, 3) and offset.shape == (2, 4, 3, 3)
    assert jnp.allclose(cond, cond_ref, atol=1e-4, rtol=1e-4)
    assert jnp.allclose(offset, offset_ref, atol=1e-4, rtol=1e-4)

    print("KERNEL_OK")
</pallas_src>

<mosaic_0001>
module attributes {stable_mosaic.version = 11 : i64} {
  func.func @kernel(%arg0: i32, %arg1: memref<1x256x32xf32, #tpu.memory_space<vmem>>, %arg2: memref<32x10xf32, #tpu.memory_space<vmem>>, %arg3: memref<91x16xf32, #tpu.memory_space<vmem>>, %arg4: memref<145x32xf32, #tpu.memory_space<vmem>>, %arg5: memref<5x33xf32, #tpu.memory_space<vmem>>, %arg6: memref<3xf32, #tpu.memory_space<smem>>, %arg7: memref<1x5x9xf32, #tpu.memory_space<vmem>>) attributes {dimension_semantics = [#tpu.dimension_semantics<parallel>], iteration_bounds = array<i64: 2>, scalar_prefetch = 0 : i64, scratch_operands = 0 : i64, tpu.core_type = #tpu.core_type<tc>, window_params = [{transform_indices = @transform_0, window_bounds = array<i64: 1, 256, 32>}, {pipeline_mode = #tpu.pipeline_mode<synchronous>, transform_indices = @transform_1, window_bounds = array<i64: 32, 10>}, {pipeline_mode = #tpu.pipeline_mode<synchronous>, transform_indices = @transform_2, window_bounds = array<i64: 91, 16>}, {pipeline_mode = #tpu.pipeline_mode<synchronous>, transform_indices = @transform_3, window_bounds = array<i64: 145, 32>}, {pipeline_mode = #tpu.pipeline_mode<synchronous>, transform_indices = @transform_4, window_bounds = array<i64: 5, 33>}, {transform_indices = @transform_5, window_bounds = array<i64: 3>}, {transform_indices = @transform_6, window_bounds = array<i64: 1, 5, 9>}]} {
    %c0 = arith.constant 0 : index
    %0 = memref.load %arg6[%c0] : memref<3xf32, #tpu.memory_space<smem>>
    %c1 = arith.constant 1 : index
    %1 = memref.load %arg6[%c1] : memref<3xf32, #tpu.memory_space<smem>>
    %c2 = arith.constant 2 : index
    %2 = memref.load %arg6[%c2] : memref<3xf32, #tpu.memory_space<smem>>
    %c0_0 = arith.constant 0 : index
    %c0_1 = arith.constant 0 : index
    %c0_2 = arith.constant 0 : index
    %3 = vector.load %arg1[%c0_0, %c0_1, %c0_2] : memref<1x256x32xf32, #tpu.memory_space<vmem>>, vector<1x256x32xf32>
    %4 = vector.shape_cast %3 : vector<1x256x32xf32> to vector<256x32xf32>
    %c0_3 = arith.constant 0 : index
    %c0_4 = arith.constant 0 : index
    %5 = vector.load %arg2[%c0_3, %c0_4] : memref<32x10xf32, #tpu.memory_space<vmem>>, vector<32x10xf32>
    %cst = arith.constant dense<0.000000e+00> : vector<256x10xf32>
    %6 = tpu.matmul %4, %5, %cst {dimension_numbers = #tpu.dot_dimension_numbers<[1], [0], [0], [1], [0, 0, 1, 1], [], []>} : vector<256x32xf32>, vector<32x10xf32>, vector<256x10xf32> -> vector<256x10xf32>
    %cst_5 = arith.constant 0.000000e+00 : f32
    %7 = vector.broadcast %cst_5 : f32 to vector<256x10xf32>
    %8 = arith.cmpf oge, %6, %7 : vector<256x10xf32>
    %9 = vector.broadcast %0 : f32 to vector<256x10xf32>
    %10 = arith.mulf %9, %6 : vector<256x10xf32>
    %11 = arith.select %8, %6, %10 : vector<256x10xi1>, vector<256x10xf32>
    %12 = vector.shape_cast %11 : vector<256x10xf32> to vector<16x16x10xf32>
    %13 = vector.extract_strided_slice %12 {offsets = [0, 0, 0], sizes = [15, 16, 10], strides = [1, 1, 1]} : vector<16x16x10xf32> to vector<15x16x10xf32>
    %14 = vector.extract_strided_slice %12 {offsets = [1, 0, 0], sizes = [15, 16, 10], strides = [1, 1, 1]} : vector<16x16x10xf32> to vector<15x16x10xf32>
    %15 = arith.maximumf %13, %14 : vector<15x16x10xf32>
    %16 = vector.extract_strided_slice %15 {offsets = [0, 0, 0], sizes = [14, 16, 10], strides = [1, 1, 1]} : vector<15x16x10xf32> to vector<14x16x10xf32>
    %17 = vector.shape_cast %16 : vector<14x16x10xf32> to vector<7x2x16x10xf32>
    %18 = vector.extract_strided_slice %17 {offsets = [0, 0, 0, 0], sizes = [7, 1, 16, 10], strides = [1, 1, 1, 1]} : vector<7x2x16x10xf32> to vector<7x1x16x10xf32>
    %19 = vector.shape_cast %18 : vector<7x1x16x10xf32> to vector<7x16x10xf32>
    %20 = vector.extract_strided_slice %17 {offsets = [0, 1, 0, 0], sizes = [7, 1, 16, 10], strides = [1, 1, 1, 1]} : vector<7x2x16x10xf32> to vector<7x1x16x10xf32>
    %21 = vector.shape_cast %20 : vector<7x1x16x10xf32> to vector<7x16x10xf32>
    %22 = arith.maximumf %19, %21 : vector<7x16x10xf32>
    %23 = vector.extract_strided_slice %22 {offsets = [0, 0, 0], sizes = [7, 15, 10], strides = [1, 1, 1]} : vector<7x16x10xf32> to vector<7x15x10xf32>
    %24 = vector.extract_strided_slice %22 {offsets = [0, 1, 0], sizes = [7, 15, 10], strides = [1, 1, 1]} : vector<7x16x10xf32> to vector<7x15x10xf32>
    %25 = arith.maximumf %23, %24 : vector<7x15x10xf32>
    %26 = vector.extract_strided_slice %25 {offsets = [0, 0, 0], sizes = [7, 14, 10], strides = [1, 1, 1]} : vector<7x15x10xf32> to vector<7x14x10xf32>
    %27 = vector.shape_cast %26 : vector<7x14x10xf32> to vector<7x7x2x10xf32>
    %28 = vector.extract_strided_slice %27 {offsets = [0, 0, 0, 0], sizes = [7, 7, 1, 10], strides = [1, 1, 1, 1]} : vector<7x7x2x10xf32> to vector<7x7x1x10xf32>
    %29 = vector.shape_cast %28 : vector<7x7x1x10xf32> to vector<7x7x10xf32>
    %30 = vector.extract_strided_slice %27 {offsets = [0, 0, 1, 0], sizes = [7, 7, 1, 10], strides = [1, 1, 1, 1]} : vector<7x7x2x10xf32> to vector<7x7x1x10xf32>
    %31 = vector.shape_cast %30 : vector<7x7x1x10xf32> to vector<7x7x10xf32>
    %32 = arith.maximumf %29, %31 : vector<7x7x10xf32>
    %33 = vector.extract_strided_slice %32 {offsets = [0, 0, 0], sizes = [5, 5, 10], strides = [1, 1, 1]} : vector<7x7x10xf32> to vector<5x5x10xf32>
    %34 = vector.extract_strided_slice %32 {offsets = [0, 1, 0], sizes = [5, 5, 10], strides = [1, 1, 1]} : vector<7x7x10xf32> to vector<5x5x10xf32>
    %35 = vector.extract_strided_slice %32 {offsets = [0, 2, 0], sizes = [5, 5, 10], strides = [1, 1, 1]} : vector<7x7x10xf32> to vector<5x5x10xf32>
    %36 = vector.extract_strided_slice %32 {offsets = [1, 0, 0], sizes = [5, 5, 10], strides = [1, 1, 1]} : vector<7x7x10xf32> to vector<5x5x10xf32>
    %37 = vector.extract_strided_slice %32 {offsets = [1, 1, 0], sizes = [5, 5, 10], strides = [1, 1, 1]} : vector<7x7x10xf32> to vector<5x5x10xf32>
    %38 = vector.extract_strided_slice %32 {offsets = [1, 2, 0], sizes = [5, 5, 10], strides = [1, 1, 1]} : vector<7x7x10xf32> to vector<5x5x10xf32>
    %39 = vector.extract_strided_slice %32 {offsets = [2, 0, 0], sizes = [5, 5, 10], strides = [1, 1, 1]} : vector<7x7x10xf32> to vector<5x5x10xf32>
    %40 = vector.extract_strided_slice %32 {offsets = [2, 1, 0], sizes = [5, 5, 10], strides = [1, 1, 1]} : vector<7x7x10xf32> to vector<5x5x10xf32>
    %41 = vector.extract_strided_slice %32 {offsets = [2, 2, 0], sizes = [5, 5, 10], strides = [1, 1, 1]} : vector<7x7x10xf32> to vector<5x5x10xf32>
    %cst_6 = arith.constant 1.000000e+00 : f32
    %42 = vector.broadcast %cst_6 : f32 to vector<5x5x1xf32>
    %43 = tpu.concatenate %33, %34, %35, %36, %37, %38, %39, %40, %41, %42 in 2 : vector<5x5x10xf32>, vector<5x5x10xf32>, vector<5x5x10xf32>, vector<5x5x10xf32>, vector<5x5x10xf32>, vector<5x5x10xf32>, vector<5x5x10xf32>, vector<5x5x10xf32>, vector<5x5x10xf32>, vector<5x5x1xf32> -> vector<5x5x91xf32>
    %44 = vector.shape_cast %43 : vector<5x5x91xf32> to vector<25x91xf32>
    %c0_7 = arith.constant 0 : index
    %c0_8 = arith.constant 0 : index
    %45 = vector.load %arg3[%c0_7, %c0_8] : memref<91x16xf32, #tpu.memory_space<vmem>>, vector<91x16xf32>
    %cst_9 = arith.constant dense<0.000000e+00> : vector<25x16xf32>
    %46 = tpu.matmul %44, %45, %cst_9 {dimension_numbers = #tpu.dot_dimension_numbers<[1], [0], [0], [1], [0, 0, 1, 1], [], []>} : vector<25x91xf32>, vector<91x16xf32>, vector<25x16xf32> -> vector<25x16xf32>
    %cst_10 = arith.constant 0.000000e+00 : f32
    %47 = vector.broadcast %cst_10 : f32 to vector<25x16xf32>
    %48 = arith.cmpf oge, %46, %47 : vector<25x16xf32>
    %49 = vector.broadcast %1 : f32 to vector<25x16xf32>
    %50 = arith.mulf %49, %46 : vector<25x16xf32>
    %51 = arith.select %48, %46, %50 : vector<25x16xi1>, vector<25x16xf32>
    %52 = vector.shape_cast %51 : vector<25x16xf32> to vector<5x5x16xf32>
    %53 = vector.extract_strided_slice %52 {offsets = [0, 0, 0], sizes = [3, 3, 16], strides = [1, 1, 1]} : vector<5x5x16xf32> to vector<3x3x16xf32>
    %54 = vector.extract_strided_slice %52 {offsets = [0, 1, 0], sizes = [3, 3, 16], strides = [1, 1, 1]} : vector<5x5x16xf32> to vector<3x3x16xf32>
    %55 = vector.extract_strided_slice %52 {offsets = [0, 2, 0], sizes = [3, 3, 16], strides = [1, 1, 1]} : vector<5x5x16xf32> to vector<3x3x16xf32>
    %56 = vector.extract_strided_slice %52 {offsets = [1, 0, 0], sizes = [3, 3, 16], strides = [1, 1, 1]} : vector<5x5x16xf32> to vector<3x3x16xf32>
    %57 = vector.extract_strided_slice %52 {offsets = [1, 1, 0], sizes = [3, 3, 16], strides = [1, 1, 1]} : vector<5x5x16xf32> to vector<3x3x16xf32>
    %58 = vector.extract_strided_slice %52 {offsets = [1, 2, 0], sizes = [3, 3, 16], strides = [1, 1, 1]} : vector<5x5x16xf32> to vector<3x3x16xf32>
    %59 = vector.extract_strided_slice %52 {offsets = [2, 0, 0], sizes = [3, 3, 16], strides = [1, 1, 1]} : vector<5x5x16xf32> to vector<3x3x16xf32>
    %60 = vector.extract_strided_slice %52 {offsets = [2, 1, 0], sizes = [3, 3, 16], strides = [1, 1, 1]} : vector<5x5x16xf32> to vector<3x3x16xf32>
    %61 = vector.extract_strided_slice %52 {offsets = [2, 2, 0], sizes = [3, 3, 16], strides = [1, 1, 1]} : vector<5x5x16xf32> to vector<3x3x16xf32>
    %cst_11 = arith.constant 1.000000e+00 : f32
    %62 = vector.broadcast %cst_11 : f32 to vector<3x3x1xf32>
    %63 = tpu.concatenate %53, %54, %55, %56, %57, %58, %59, %60, %61, %62 in 2 : vector<3x3x16xf32>, vector<3x3x16xf32>, vector<3x3x16xf32>, vector<3x3x16xf32>, vector<3x3x16xf32>, vector<3x3x16xf32>, vector<3x3x16xf32>, vector<3x3x16xf32>, vector<3x3x16xf32>, vector<3x3x1xf32> -> vector<3x3x145xf32>
    %64 = vector.shape_cast %63 : vector<3x3x145xf32> to vector<9x145xf32>
    %c0_12 = arith.constant 0 : index
    %c0_13 = arith.constant 0 : index
    %65 = vector.load %arg4[%c0_12, %c0_13] : memref<145x32xf32, #tpu.memory_space<vmem>>, vector<145x32xf32>
    %cst_14 = arith.constant dense<0.000000e+00> : vector<9x32xf32>
    %66 = tpu.matmul %64, %65, %cst_14 {dimension_numbers = #tpu.dot_dimension_numbers<[1], [0], [0], [1], [0, 0, 1, 1], [], []>} : vector<9x145xf32>, vector<145x32xf32>, vector<9x32xf32> -> vector<9x32xf32>
    %cst_15 = arith.constant 0.000000e+00 : f32
    %67 = vector.broadcast %cst_15 : f32 to vector<9x32xf32>
    %68 = arith.cmpf oge, %66, %67 : vector<9x32xf32>
    %69 = vector.broadcast %2 : f32 to vector<9x32xf32>
    %70 = arith.mulf %69, %66 : vector<9x32xf32>
    %71 = arith.select %68, %66, %70 : vector<9x32xi1>, vector<9x32xf32>
    %cst_16 = arith.constant 1.000000e+00 : f32
    %72 = vector.broadcast %cst_16 : f32 to vector<9x1xf32>
    %73 = tpu.concatenate %71, %72 in 1 : vector<9x32xf32>, vector<9x1xf32> -> vector<9x33xf32>
    %c0_17 = arith.constant 0 : index
    %c0_18 = arith.constant 0 : index
    %74 = vector.load %arg5[%c0_17, %c0_18] : memref<5x33xf32, #tpu.memory_space<vmem>>, vector<5x33xf32>
    %cst_19 = arith.constant dense<0.000000e+00> : vector<5x9xf32>
    %75 = tpu.matmul %74, %73, %cst_19 {dimension_numbers = #tpu.dot_dimension_numbers<[1], [1], [0], [0], [0, 0, 1, 0], [], []>} : vector<5x33xf32>, vector<9x33xf32>, vector<5x9xf32> -> vector<5x9xf32>
    %76 = vector.extract_strided_slice %75 {offsets = [0, 0], sizes = [1, 9], strides = [1, 1]} : vector<5x9xf32> to vector<1x9xf32>
    %77 = arith.negf %76 : vector<1x9xf32>
    %78 = math.exp %77 : vector<1x9xf32>
    %cst_20 = arith.constant 1.000000e+00 : f32
    %79 = vector.broadcast %cst_20 : f32 to vector<1x9xf32>
    %80 = arith.addf %79, %78 : vector<1x9xf32>
    %81 = arith.divf %79, %80 : vector<1x9xf32>
    %82 = vector.extract_strided_slice %75 {offsets = [1, 0], sizes = [4, 9], strides = [1, 1]} : vector<5x9xf32> to vector<4x9xf32>
    %83 = tpu.concatenate %81, %82 in 0 : vector<1x9xf32>, vector<4x9xf32> -> vector<5x9xf32>
    %c0_21 = arith.constant 0 : index
    %c0_22 = arith.constant 0 : index
    %c0_23 = arith.constant 0 : index
    %84 = vector.load %arg7[%c0_21, %c0_22, %c0_23] : memref<1x5x9xf32, #tpu.memory_space<vmem>>, vector<1x5x9xf32>
    %85 = vector.shape_cast %84 : vector<1x5x9xf32> to vector<5x9xf32>
    %86 = vector.shape_cast %83 : vector<5x9xf32> to vector<1x5x9xf32>
    tpu.vector_store %arg7[%c0_21, %c0_22, %c0_23], %86 {strides = array<i32>} : memref<1x5x9xf32, #tpu.memory_space<vmem>>, vector<1x5x9xf32>,
    return
  }
  func.func @transform_0(%arg0: i32) -> (i32, i32, i32) {
    %c0_i32 = arith.constant 0 : i32
    %c0_i32_0 = arith.constant 0 : i32
    %c0_i32_1 = arith.constant 0 : i32
    return %arg0, %c0_i32, %c0_i32_0 : i32, i32, i32
  }
  func.func @transform_1(%arg0: i32) -> (i32, i32) {
    %c0_i32 = arith.constant 0 : i32
    %c0_i32_0 = arith.constant 0 : i32
    %c0_i32_1 = arith.constant 0 : i32
    return %c0_i32, %c0_i32_0 : i32, i32
  }
  func.func @transform_2(%arg0: i32) -> (i32, i32) {
    %c0_i32 = arith.constant 0 : i32
    %c0_i32_0 = arith.constant 0 : i32
    %c0_i32_1 = arith.constant 0 : i32
    return %c0_i32, %c0_i32_0 : i32, i32
  }
  func.func @transform_3(%arg0: i32) -> (i32, i32) {
    %c0_i32 = arith.constant 0 : i32
    %c0_i32_0 = arith.constant 0 : i32
    %c0_i32_1 = arith.constant 0 : i32
    return %c0_i32, %c0_i32_0 : i32, i32
  }
  func.func @transform_4(%arg0: i32) -> (i32, i32) {
    %c0_i32 = arith.constant 0 : i32
    %c0_i32_0 = arith.constant 0 : i32
    %c0_i32_1 = arith.constant 0 : i32
    return %c0_i32, %c0_i32_0 : i32, i32
  }
  func.func @transform_5(%arg0: i32) -> i32 {
    %c0_i32 = arith.constant 0 : i32
    %c0_i32_0 = arith.constant 0 : i32
    return %c0_i32 : i32
  }
  func.func @transform_6(%arg0: i32) -> (i32, i32, i32) {
    %c0_i32 = arith.constant 0 : i32
    %c0_i32_0 = arith.constant 0 : i32
    %c0_i32_1 = arith.constant 0 : i32
    return %arg0, %c0_i32, %c0_i32_0 : i32, i32, i32
  }
}

</mosaic_0001>

<bundles_post_ra>
// kernel: tpu_custom_call.1
= control target key start
LH: loop header
LB: loop body
LE: loop exit
PB: predicated region body
PF: predicated region fallthrough
CT: control target
= control target key end

     0   :  { %11 = vsyncpa [#allocation3], 0  ;;  %s3803_s21 = smov 0   ;;  %s4918_s0 = inlined_call_operand.vmem [shape: f32[2,256,32], index: 0, kind: input, shape index: {}]   ;;  %s4919_s1 = inlined_call_operand.vmem [shape: f32[32,10], index: 1, kind: input, shape index: {}]   ;;  %s4920_s2 = inlined_call_operand.vmem [shape: f32[91,16], index: 2, kind: input, shape index: {}]   ;;  %s4921_s3 = inlined_call_operand.vmem [shape: f32[145,32], index: 3, kind: input, shape index: {}]   ;;  %s4922_s4 = inlined_call_operand.vmem [shape: f32[5,33], index: 4, kind: input, shape index: {}]   ;;  %s4923_s5 = inlined_call_operand.vmem [shape: f32[3], index: 5, kind: input, shape index: {}]   ;;  %s4924_s6 = inlined_call_operand.vmem [shape: f32[2,5,9], index: 6, kind: output, shape index: {}]  }
   0x1 LB: > { %s3809_s22 = sadd.s32 4294967295, %s3745_s21   ;;  %p3351_p0 = scmp.ge.s32.totalorder %s3745_s21, 1  ;;  %s3745_s21 = sphi %s3803_s21, %s17_s21  }
   0x2   : > { %p179_p1 = scmp.lt.s32.totalorder %s3745_s21, 3  ;;  %s204_s25 = sshll.u32 %s4923_s5, 4  ;;  %s205_s25 = int_to_ptr.vmem [resolvable:$true] %s204_s25 }
   0x3   : > { %p3685_p3 = scmp.eq.s32.totalorder %s3809_s22, 0  ;;  %s3720_s27 = scalar_lea.vmem %s205_s25, 16 }
   0x4   : > { %p3816_p2 = pnand %p3351_p0, %p179_p1  ;;  %p3721_p6 = scmp.ne.s32.totalorder %s205_s25, %s3720_s27 }
   0x5   : > { %p3728_p10 = scmp.lt.s32.totalorder %s205_s25, %s205_s25  ;;  %p3729_p11 = scmp.lt.s32.totalorder %s3720_s27, %s3720_s27 }
   0x6   : > { %p3681_p4 = pneg %p3816_p2 }
   0x7   : > { %p3730_p12 = por %p3729_p11, %p3728_p10 }
   0x8   : > { %p3682_p5 = pnand %p3685_p3, %p3681_p4 }
   0xa   : > { %p3722_p7 = pneg %p3682_p5 }
   0xc   : > { %p3723_p8 = pnand %p3722_p7, %p3721_p6 }
   0xe   : > { %p3724_p9 = pneg %p3723_p8 }
  0x10   : > { %p3731_p13 = pnand %p3730_p12, %p3724_p9 }
  0x12   : > { %3734 = shalt.err (!%p3731_p13)
}
  0x13   : > { %s3747_s28 = smov [#allocation2]   ;;  %225 = sbr.rel (%p3816_p2) target bundleno = 1396 (0x574), region = 44 }
  0x14   : > { %3684 = dma.vmem_to_smem (!%p3682_p5), %s205_s25, 16, %s3747_s28, [#allocation3]  }
  0x1a   : > { %3740 = dma.done.wait (%p3685_p3), [#allocation3], 16  }
  0x1b   : > { %3742 = vsyncadd (%p3685_p3), [#allocation3], 4294967280 }
  0x1c   : > { %231 = sfence }
  0x1d   : > { %v299_v0 = vld [vmem:[%s4919_s1] sm:$0xff]  ;;  %v300_v1 = vld [vmem:[%s4919_s1 + $0x8] sm:$0xff]  ;;  %v301_v2 = vld [vmem:[%s4919_s1 + $0x10] sm:$0xff]  ;;  %p255_p0 = scmp.lt.s32.totalorder %s3809_s22, 1  ;;  %vm303_vm0 = vcmask 261120   ;;  %s264_s17 = sld [smem:[#allocation2]]  ;;  %v838_v49 = vlaneseq }
  0x1e   : > { %v3612_v3 = vpack.c.bf16 %v300_v1, %v299_v0  ;;  %v302_v4 = vld [vmem:[%s4919_s1 + $0x18] sm:$0xff]  ;;  %v3748_v47 = vmov 1983009808   ;;  %vm770_vm9 = vcmask 1046528   ;;  %s3749_s18 = smov 10   ;;  %s3750_s19 = smov 20  }
  0x1f   : > { %v3616_v5 = vpack.c.bf16 %v302_v4, %v301_v2  ;;  %s4927_s22 = smov (!%p255_p0, %s3809_s22), 1  ;;  %v836_v48 = vunpack.c.l.s4 %v3748_v47  ;;  %v3921_v60 = vshrl.u32 %v838_v49, 7  ;;  %s3751_s20 = smov 30  }
  0x20   : > { %3613 = vmatprep.subr.bf16.mxu0 %v3612_v3  ;;  %s3463_s13 = sshll.u32 %s4927_s22, 8  ;;  %s3752_s23 = smov 40  }
  0x21   : > { %3615 = vmatpush3.bf16.msra.mxu0 %v3612_v3  ;;  %s3851_s16 = scalar_lea.vmem %s4918_s0, %s3463_s13  ;;  %v837_v59 = vunpack.c.0.s8 %v836_v48  ;;  %s3753_s24 = smov 50  }
  0x22   : > { %3617 = vmatprep.subr.bf16.mxu0 %v3616_v5  ;;  %v267_v6 = vld [vmem:[%s3851_s16] sm:$0xff]  ;;  %v268_v7 = vld [vmem:[%s3851_s16 + $0x8] sm:$0xff]  ;;  %v269_v8 = vld [vmem:[%s3851_s16 + $0x10] sm:$0xff]  ;;  %s3754_s25 = smov 70   ;;  %s3755_s26 = smov 60  }
  0x23   : > { %3527 = vmatprep.mubr.msk.f32.mxu0 %vm303_vm0, %v267_v6  ;;  %v270_v9 = vld [vmem:[%s3851_s16 + $0x18] sm:$0xff]  ;;  %v271_v10 = vld [vmem:[%s3851_s16 + $0x20] sm:$0xff]  ;;  %v272_v11 = vld [vmem:[%s3851_s16 + $0x28] sm:$0xff]  ;;  %v3913_v37 = vstv %s264_s17  ;;  %s3756_s27 = smov 80   ;;  %s3759_s9 = smov 48  }
  0x24   : > { %v273_v12 = vld [vmem:[%s3851_s16 + $0x30] sm:$0xff]  ;;  %v274_v13 = vld [vmem:[%s3851_s16 + $0x38] sm:$0xff]  ;;  %v275_v14 = vld [vmem:[%s3851_s16 + $0x40] sm:$0xff]  ;;  %s3760_s10 = smov 16   ;;  %s3761_s11 = smov 96  }
  0x25   : > { %3619 = vmatpush3.bf16.msra.mxu0 %v3616_v5  ;;  %v276_v15 = vld [vmem:[%s3851_s16 + $0x48] sm:$0xff]  ;;  %v277_v16 = vld [vmem:[%s3851_s16 + $0x50] sm:$0xff]  ;;  %v278_v17 = vld [vmem:[%s3851_s16 + $0x58] sm:$0xff]  ;;  %v3926_v5 = vsub.s32 %v837_v59, %v3921_v60  ;;  %s3762_s12 = smov 32   ;;  %s3763_s13 = smov 64  }
  0x26   : > { %v279_v18 = vld [vmem:[%s3851_s16 + $0x60] sm:$0xff]  ;;  %v280_v19 = vld [vmem:[%s3851_s16 + $0x68] sm:$0xff]  ;;  %v281_v20 = vld [vmem:[%s3851_s16 + $0x70] sm:$0xff]  ;;  %s3360_s14 = sld [smem:[#allocation2 + $0x2]]  ;;  %s3358_s15 = sshll.u32 %s4927_s22, 3 }
  0x27   : > { %v282_v21 = vld [vmem:[%s3851_s16 + $0x78] sm:$0xff]  ;;  %v283_v22 = vld [vmem:[%s3851_s16 + $0x80] sm:$0xff]  ;;  %v284_v23 = vld [vmem:[%s3851_s16 + $0x88] sm:$0xff] }
  0x28   : > { %3528 = vmatmul.mubr.msk.f32.vlgmr.msra.gmra.mrb[0].mxu0 %vm303_vm0, %v268_v7  ;;  %v285_v24 = vld [vmem:[%s3851_s16 + $0x90] sm:$0xff]  ;;  %v286_v25 = vld [vmem:[%s3851_s16 + $0x98] sm:$0xff]  ;;  %v287_v26 = vld [vmem:[%s3851_s16 + $0xa0] sm:$0xff] }
  0x29   : > { %3530 = vmatprep.mubr.msk.f32.mxu0 %vm303_vm0, %v269_v8  ;;  %v288_v27 = vld [vmem:[%s3851_s16 + $0xa8] sm:$0xff]  ;;  %v289_v28 = vld [vmem:[%s3851_s16 + $0xb0] sm:$0xff]  ;;  %v290_v29 = vld [vmem:[%s3851_s16 + $0xb8] sm:$0xff] }
  0x2a   : > { %v291_v30 = vld [vmem:[%s3851_s16 + $0xc0] sm:$0xff]  ;;  %v292_v31 = vld [vmem:[%s3851_s16 + $0xc8] sm:$0xff]  ;;  %v293_v32 = vld [vmem:[%s3851_s16 + $0xd0] sm:$0xff] }
  0x2b   : > { %v294_v33 = vld [vmem:[%s3851_s16 + $0xd8] sm:$0xff]  ;;  %v295_v34 = vld [vmem:[%s3851_s16 + $0xe0] sm:$0xff]  ;;  %v296_v35 = vld [vmem:[%s3851_s16 + $0xe8] sm:$0xff] }
  0x2c   : > { %3531 = vmatmul.mubr.msk.f32.gmra.mrb[2].mxu0 %vm303_vm0, %v270_v9 }
  0x2d   : > { %3533 = vmatprep.mubr.msk.f32.mxu0 %vm303_vm0, %v271_v10 }
  0x30   : > { %3534 = vmatmul.mubr.msk.f32.gmra.mrb[4].mxu0 %vm303_vm0, %v272_v11 }
  0x31   : > { %3536 = vmatprep.mubr.msk.f32.mxu0 %vm303_vm0, %v273_v12 }
  0x34   : > { %3537 = vmatmul.mubr.msk.f32.gmra.mrb[6].mxu0 %vm303_vm0, %v274_v13 }
  0x35   : > { %3539 = vmatprep.mubr.msk.f32.mxu0 %vm303_vm0, %v275_v14 }
  0x38   : > { %3540 = vmatmul.mubr.msk.f32.gmra.mrb[8].mxu0 %vm303_vm0, %v276_v15 }
  0x39   : > { %3542 = vmatprep.mubr.msk.f32.mxu0 %vm303_vm0, %v277_v16 }
  0x3c   : > { %3543 = vmatmul.mubr.msk.f32.gmra.mrb[10].mxu0 %vm303_vm0, %v278_v17 }
  0x3d   : > { %3545 = vmatprep.mubr.msk.f32.mxu0 %vm303_vm0, %v279_v18 }
  0x40   : > { %3546 = vmatmul.mubr.msk.f32.gmra.mrb[12].mxu0 %vm303_vm0, %v280_v19 }
  0x41   : > { %3548 = vmatprep.mubr.msk.f32.mxu0 %vm303_vm0, %v281_v20 }
  0x44   : > { %3549 = vmatmul.mubr.msk.f32.gmra.mrb[14].mxu0 %vm303_vm0, %v282_v21 }
  0x45   : > { %3551 = vmatprep.mubr.msk.f32.mxu0 %vm303_vm0, %v283_v22 }
  0x48   : > { %3552 = vmatmul.mubr.msk.f32.gmra.mrb[16].mxu0 %vm303_vm0, %v284_v23 }
  0x49   : > { %3554 = vmatprep.mubr.msk.f32.mxu0 %vm303_vm0, %v285_v24 }
  0x4c   : > { %3555 = vmatmul.mubr.msk.f32.gmra.mrb[18].mxu0 %vm303_vm0, %v286_v25 }
  0x4d   : > { %3557 = vmatprep.mubr.msk.f32.mxu0 %vm303_vm0, %v287_v26 }
  0x50   : > { %3558 = vmatmul.mubr.msk.f32.gmra.mrb[20].mxu0 %vm303_vm0, %v288_v27 }
  0x51   : > { %3560 = vmatprep.mubr.msk.f32.mxu0 %vm303_vm0, %v289_v28 }
  0x54   : > { %3561 = vmatmul.mubr.msk.f32.gmra.mrb[22].mxu0 %vm303_vm0, %v290_v29 }
  0x55   : > { %3563 = vmatprep.mubr.msk.f32.mxu0 %vm303_vm0, %v291_v30 }
  0x58   : > { %3564 = vmatmul.mubr.msk.f32.gmra.mrb[24].mxu0 %vm303_vm0, %v292_v31 }
  0x59   : > { %3566 = vmatprep.mubr.msk.f32.mxu0 %vm303_vm0, %v293_v32 }
  0x5c   : > { %3567 = vmatmul.mubr.msk.f32.gmra.mrb[26].mxu0 %vm303_vm0, %v294_v33  ;;  %v3943_v33 = vsub.s32 0, %v3921_v60 }
  0x5d   : > { %3569 = vmatprep.mubr.msk.f32.mxu0 %vm303_vm0, %v295_v34 }
  0x60   : > { %3570 = vmatmul.mubr.msk.f32.gmra.mrb[28].mxu0 %vm303_vm0, %v296_v35 }
  0xfb   : > { %v3529_v36 = vpop.f32.mrb[0].mxu0 }
  0xfc   : > { %v466_v38 = vpop.f32.mrb[1].mxu0  ;;  %v655_v39 = vmul.f32 %v3529_v36, %v3913_v37  ;;  %vm624_vm1 = vcmp.ge.f32.partialorder %v3529_v36, 0.0 }
  0xfd   : > { %v654_v40 = vmul.f32 %v3913_v37, %v466_v38  ;;  %vm623_vm2 = vcmp.ge.f32.partialorder %v466_v38, 0.0 }
  0xfe   : > { %v685_v45 = vsel %vm624_vm1, %v3529_v36, %v655_v39 }
  0xff   : > { %v3532_v41 = vpop.f32.mrb[2].mxu0  ;;  %v684_v50 = vsel %vm623_vm2, %v466_v38, %v654_v40 }
 0x100   : > { %vm626_vm3 = vcmp.ge.f32.partialorder %v3532_v41, 0.0  ;;  %v657_v42 = vmul.f32 %v3532_v41, %v3913_v37  ;;  %v476_v43 = vpop.f32.mrb[3].mxu0 }
 0x101   : > { %vm625_vm4 = vcmp.ge.f32.partialorder %v476_v43, 0.0  ;;  %v656_v44 = vmul.f32 %v3913_v37, %v476_v43 }
 0x102   : > { %v687_v46 = vsel %vm626_vm3, %v3532_v41, %v657_v42 }
 0x103   : > { %v715_v51 = vmax.f32 %v685_v45, %v687_v46  ;;  %v686_v52 = vsel %vm625_vm4, %v476_v43, %v656_v44  ;;  %v3535_v53 = vpop.f32.mrb[4].mxu0  ;;  %vm1435_vm4 = vcmask 1041409  }
 0x104   : > { %v714_v54 = vmax.f32 %v684_v50, %v686_v52  ;;  %vm628_vm5 = vcmp.ge.f32.partialorder %v3535_v53, 0.0  ;;  %v659_v55 = vmul.f32 %v3535_v53, %v3913_v37  ;;  %v486_v56 = vpop.f32.mrb[5].mxu0 }
 0x105   : > { %vm627_vm6 = vcmp.ge.f32.partialorder %v486_v56, 0.0  ;;  %v658_v57 = vmul.f32 %v3913_v37, %v486_v56 }
 0x106   : > { %v689_v58 = vsel %vm628_vm5, %v3535_v53, %v659_v55  ;;  %vm1437_vm5 = vcmask 1042434  }
 0x107   : > { %v717_v61 = vmax.f32 %v687_v46, %v689_v58  ;;  %v688_v62 = vsel %vm627_vm6, %v486_v56, %v658_v57  ;;  %v3538_v63 = vpop.f32.mrb[6].mxu0 }
 0x108   : > { %v716_v0 = vmax.f32 %v686_v52, %v688_v62  ;;  %vm630_vm7 = vcmp.ge.f32.partialorder %v3538_v63, 0.0  ;;  %v661_v1 = vmul.f32 %v3538_v63, %v3913_v37  ;;  %v496_v2 = vpop.f32.mrb[7].mxu0 }
 0x109   : > { %v743_v3 = vmax.f32 %v715_v51, %v717_v61  ;;  %vm629_vm8 = vcmp.ge.f32.partialorder %v496_v2, 0.0  ;;  %v660_v4 = vmul.f32 %v3913_v37, %v496_v2 }
 0x10a   : > { %v742_v6 = vmax.f32 %v714_v54, %v716_v0  ;;  %v691_v7 = vsel %vm630_vm7, %v3538_v63, %v661_v1  ;;  %vm1439_vm7 = vcmask 1043459  }
 0x10b   : > { %v772_v8 = vrot.slane %v743_v3, 1  ;;  %v719_v9 = vmax.f32 %v689_v58, %v691_v7  ;;  %v690_v10 = vsel %vm629_vm8, %v496_v2, %v660_v4  ;;  %v3541_v11 = vpop.f32.mrb[8].mxu0  ;;  %vm1441_vm8 = vcmask 1044484  }
 0x10c   : > { %v771_v12 = vrot.slane %v742_v6, 1  ;;  %v718_v13 = vmax.f32 %v688_v62, %v690_v10  ;;  %vm632_vm10 = vcmp.ge.f32.partialorder %v3541_v11, 0.0  ;;  %v663_v14 = vmul.f32 %v3541_v11, %v3913_v37  ;;  %v506_v15 = vpop.f32.mrb[9].mxu0 }
 0x10d   : > { %v3929_v16 = vmax.f32 %v743_v3, %v772_v8  ;;  %vm631_vm11 = vcmp.ge.f32.partialorder %v506_v15, 0.0  ;;  %v662_v17 = vmul.f32 %v3913_v37, %v506_v15 }
 0x10e   : > { %v773_v18 = vsel %vm770_vm9, %v771_v12, %v772_v8  ;;  %v693_v19 = vsel %vm632_vm10, %v3541_v11, %v663_v14 }
 0x10f   : > { %v806_v20 = vmax.f32 %v742_v6, %v773_v18  ;;  %v721_v21 = vmax.f32 %v691_v7, %v693_v19  ;;  %v3544_v22 = vpop.f32.mrb[10].mxu0  ;;  %v3935_v23 = vrot.slane %v3929_v16, %v3926_v5  ;;  %v692_v24 = vsel %vm631_vm11, %v506_v15, %v662_v17 }
 0x110   : > { %vm634_vm12 = vcmp.ge.f32.partialorder %v3544_v22, 0.0  ;;  %v665_v25 = vmul.f32 %v3544_v22, %v3913_v37  ;;  %v516_v26 = vpop.f32.mrb[11].mxu0  ;;  %v720_v30 = vmax.f32 %v690_v10, %v692_v24  ;;  %v851_v34 = vcombine.high %v3929_v16, %v3929_v16 }
 0x111   : > { %v834_v27 = vcombine.high %v806_v20, %v806_v20  ;;  %v3939_v28 = vrot.slane %v806_v20, %v3926_v5  ;;  %v745_v29 = vmax.f32 %v719_v9, %v721_v21  ;;  %vm633_vm13 = vcmp.ge.f32.partialorder %v516_v26, 0.0 }
 0x112   : > { %v695_v31 = vsel %vm634_vm12, %v3544_v22, %v665_v25  ;;  %v664_v32 = vmul.f32 %v3913_v37, %v516_v26  ;;  %v744_v40 = vmax.f32 %v718_v13, %v720_v30  ;;  %v3959_v47 = vcombine.high %v3935_v23, %v3935_v23 }
 0x113   : > { %v3948_v35 = vrot.slane %v834_v27, %v3926_v5  ;;  %v3952_v36 = vcombine.high %v3939_v28, %v3939_v28  ;;  %v775_v38 = vrot.slane %v745_v29, 1  ;;  %v3547_v39 = vpop.f32.mrb[12].mxu0  ;;  %v723_v41 = vmax.f32 %v693_v19, %v695_v31 }
 0x114   : > { %v694_v42 = vsel %vm633_vm13, %v516_v26, %v664_v32  ;;  %vm636_vm14 = vcmp.ge.f32.partialorder %v3547_v39, 0.0  ;;  %v526_v43 = vpop.f32.mrb[13].mxu0  ;;  %v667_v46 = vmul.f32 %v3547_v39, %v3913_v37  ;;  %v774_v48 = vrot.slane %v744_v40, 1 }
 0x115   : > { %v3954_v44 = vmax.f32 %v745_v29, %v775_v38  ;;  %v722_v45 = vmax.f32 %v692_v24, %v694_v42  ;;  %vm635_vm15 = vcmp.ge.f32.partialorder %v526_v43, 0.0  ;;  %v666_v49 = vmul.f32 %v3913_v37, %v526_v43 }
 0x116   : > { %v850_v50 = vcombine.high %v3948_v35, %v3948_v35  ;;  %v697_v53 = vsel %vm636_vm14, %v3547_v39, %v667_v46  ;;  %v3394_v55 = vrot.slane %v3952_v36, 9  ;;  %v776_v56 = vsel %vm770_vm9, %v774_v48, %v775_v38 }
 0x117   : > { %v884_v51 = vcombine.high %v3954_v44, %v3954_v44  ;;  %v3968_v52 = vrot.slane %v3954_v44, %v3926_v5  ;;  %v3550_v54 = vpop.f32.mrb[14].mxu0  ;;  %v725_v57 = vmax.f32 %v695_v31, %v697_v53  ;;  %v696_v58 = vsel %vm635_vm15, %v526_v43, %v666_v49 }
 0x118   : > { %vm638_vm1 = vcmp.ge.f32.partialorder %v3550_v54, 0.0  ;;  %v536_v59 = vpop.f32.mrb[15].mxu0  ;;  %v808_v61 = vmax.f32 %v744_v40, %v776_v56  ;;  %v724_v62 = vmax.f32 %v694_v42, %v696_v58  ;;  %v669_v63 = vmul.f32 %v3550_v54, %v3913_v37 }
 0x119   : > { %vm637_vm2 = vcmp.ge.f32.partialorder %v536_v59, 0.0  ;;  %v747_v0 = vmax.f32 %v723_v41, %v725_v57  ;;  %v668_v1 = vmul.f32 %v3913_v37, %v536_v59  ;;  %v3395_v2 = vrot.slane %v3948_v35, 9 }
 0x11a   : > { %v3396_v3 = vrot.slane %v850_v50, 9  ;;  %v867_v4 = vcombine.high %v808_v61, %v808_v61  ;;  %v3976_v6 = vrot.slane %v808_v61, %v3926_v5  ;;  %v746_v7 = vmax.f32 %v722_v45, %v724_v62 }
 0x11b   : > { %v699_v8 = vsel %vm638_vm1, %v3550_v54, %v669_v63  ;;  %v3553_v9 = vpop.f32.mrb[16].mxu0  ;;  %v778_v10 = vrot.slane %v747_v0, 1  ;;  %v698_v12 = vsel %vm637_vm2, %v536_v59, %v668_v1  ;;  %v3397_v25 = vrot.slane %v3935_v23, 9 }
 0x11c   : > { %v727_v11 = vmax.f32 %v697_v53, %v699_v8  ;;  %vm640_vm3 = vcmp.ge.f32.partialorder %v3553_v9, 0.0  ;;  %v546_v13 = vpop.f32.mrb[17].mxu0  ;;  %v3979_v14 = vrot.slane %v867_v4, %v3926_v5  ;;  %v3983_v15 = vcombine.high %v3976_v6, %v3976_v6 }
 0x11d   : > { %v3400_v17 = vrot.slane %v3976_v6, 9  ;;  %v777_v18 = vrot.slane %v746_v7, 1  ;;  %v3986_v19 = vmax.f32 %v747_v0, %v778_v10  ;;  %v726_v20 = vmax.f32 %v696_v58, %v698_v12 }
 0x11e   : > { %v671_v21 = vmul.f32 %v3553_v9, %v3913_v37  ;;  %vm639_vm6 = vcmp.ge.f32.partialorder %v546_v13, 0.0  ;;  %v670_v24 = vmul.f32 %v3913_v37, %v546_v13  ;;  %v3398_v26 = vrot.slane %v3959_v47, 9 }
 0x11f   : > { %v779_v22 = vsel %vm770_vm9, %v777_v18, %v778_v10  ;;  %v3556_v27 = vpop.f32.mrb[18].mxu0  ;;  %v917_v29 = vcombine.high %v3986_v19, %v3986_v19  ;;  %v3997_v30 = vrot.slane %v3986_v19, %v3926_v5  ;;  %v1262_v41 = vmax.f32 %v3952_v36, %v3394_v55 }
 0x120   : > { %v810_v31 = vmax.f32 %v746_v7, %v779_v22  ;;  %v4000_v32 = vsel %vm640_vm3, %v3553_v9, %v671_v21  ;;  %v556_v38 = vpop.f32.mrb[19].mxu0  ;;  %v4003_v40 = vsel %vm639_vm6, %v546_v13, %v670_v24  ;;  %v1263_v42 = vmax.f32 %v3948_v35, %v3395_v2 }
 0x121   : > { %v729_v39 = vmax.f32 %v699_v8, %v4000_v32  ;;  %v728_v46 = vmax.f32 %v698_v12, %v4003_v40  ;;  %v1264_v48 = vmax.f32 %v850_v50, %v3396_v3  ;;  %v1265_v53 = vmax.f32 %v3935_v23, %v3397_v25 }
 0x122   : > { %v900_v43 = vcombine.high %v810_v31, %v810_v31  ;;  %v4008_v45 = vrot.slane %v810_v31, %v3926_v5  ;;  %v1266_v54 = vmax.f32 %v3959_v47, %v3398_v26  ;;  %v4014_v56 = vrot.slane %v1262_v41, %v3943_v33 }
 0x123   : > { %v749_v49 = vmax.f32 %v727_v11, %v729_v39  ;;  %v3559_v57 = vpop.f32.mrb[20].mxu0  ;;  %v748_v58 = vmax.f32 %v726_v20, %v728_v46  ;;  %v4025_v23 = vrot.slane %v1263_v42, %v3943_v33  ;;  %v4028_v47 = vrot.slane %v1264_v48, %v3943_v33 }
 0x124   : > { %v4017_v36 = vrot.slane %v900_v43, %v3926_v5  ;;  %v4021_v35 = vcombine.high %v4008_v45, %v4008_v45  ;;  %v3407_v55 = vrot.slane %v4008_v45, 9  ;;  %v566_v50 = vpop.f32.mrb[21].mxu0  ;;  %v4031_v61 = vrot.slane %v1265_v53, %v3943_v33 }
 0x125   : > { %v781_v59 = vrot.slane %v749_v49, 1  ;;  %v780_v62 = vrot.slane %v748_v58, 1  ;;  %v1472_v63 = vrot.slane %v1266_v54, %v3943_v33  ;;  %vm642_vm10 = vcmp.ge.f32.partialorder %v3556_v27, 0.0 }
 0x126   : > { %v673_v0 = vmul.f32 %v3556_v27, %v3913_v37  ;;  %v1489_v2 = vsel %vm1435_vm4, %v4025_v23, %v4014_v56  ;;  %vm641_vm11 = vcmp.ge.f32.partialorder %v556_v38, 0.0  ;;  %v672_v3 = vmul.f32 %v3913_v37, %v556_v38 }
 0x127   : > { %v4035_v1 = vmax.f32 %v749_v49, %v781_v59  ;;  %v4041_v4 = vpop.f32.mrb[22].mxu0  ;;  %v782_v7 = vsel %vm770_vm9, %v780_v62, %v781_v59  ;;  %v1490_v8 = vsel %vm1437_vm5, %v4028_v47, %v1489_v2  ;;  %vm644_vm12 = vcmp.ge.f32.partialorder %v3559_v57, 0.0 }
 0x128   : > { %v703_v9 = vsel %vm642_vm10, %v3556_v27, %v673_v0  ;;  %v4046_v10 = vpop.f32.mrb[23].mxu0  ;;  %v812_v13 = vmax.f32 %v748_v58, %v782_v7  ;;  %v1491_v18 = vsel %vm1439_vm7, %v4031_v61, %v1490_v8  ;;  %v702_v22 = vsel %vm641_vm11, %v556_v38, %v672_v3 }
 0x129   : > { %v950_v11 = vcombine.high %v4035_v1, %v4035_v1  ;;  %v4052_v12 = vrot.slane %v4035_v1, %v3926_v5  ;;  %v1492_v20 = vsel %vm1441_vm8, %v1472_v63, %v1491_v18  ;;  %v731_v21 = vmax.f32 %v4000_v32, %v703_v9 }
 0x12a   : > { %v675_v24 = vmul.f32 %v3559_v57, %v3913_v37  ;;  %v933_v25 = vcombine.high %v812_v13, %v812_v13  ;;  %v4060_v26 = vrot.slane %v812_v13, %v3926_v5  ;;  %1509 = vrot.lane.b32.xlu0 %v1492_v20, %s3749_s18  ;;  %v730_v27 = vmax.f32 %v4003_v40, %v702_v22 }
 0x12b   : > { %v865_v31 = vrot.slane %v851_v34, %v3926_v5  ;;  %v4068_v39 = vpop.f32.mrb[24].mxu0  ;;  %v1549_v38 = vsel %vm1435_vm4, %v4028_v47, %v4025_v23  ;;  %vm643_vm13 = vcmp.ge.f32.partialorder %v566_v50, 0.0  ;;  %v674_v41 = vmul.f32 %v3913_v37, %v566_v50 }
 0x12c   : > { %v4071_v32 = vsel %vm644_vm12, %v3559_v57, %v675_v24  ;;  %v4077_v42 = vpop.f32.mrb[25].mxu0  ;;  %v4080_v40 = vrot.slane %v933_v25, %v3926_v5  ;;  %v4084_v16 = vcombine.high %v4060_v26, %v4060_v26  ;;  %v3414_v34 = vrot.slane %v4060_v26, 9 }
 0x12d   : > { %v733_v43 = vmax.f32 %v703_v9, %v4071_v32  ;;  %v3399_v46 = vrot.slane %v865_v31, 9  ;;  %v1550_v48 = vsel %vm1437_vm5, %v4031_v61, %v1549_v38  ;;  %v4090_v49 = vsel %vm643_vm13, %v566_v50, %v674_v41 }
 0x12e   : > { %v883_v53 = vcombine.high %v3979_v14, %v3979_v14  ;;  %v1551_v57 = vsel %vm1439_vm7, %v1472_v63, %v1550_v48  ;;  %v732_v58 = vmax.f32 %v702_v22, %v4090_v49  ;;  %v3401_v59 = vrot.slane %v3983_v15, 9 }
 0x12f   : > { %v751_v54 = vmax.f32 %v731_v21, %v733_v43  ;;  %v4097_v62 = vpop.f32.mrb[26].mxu0  ;;  %v1267_v0 = vmax.f32 %v865_v31, %v3399_v46  ;;  %v3402_v2 = vrot.slane %v3979_v14, 9  ;;  %v3404_v7 = vrot.slane %v3968_v52, 9 }
 0x130   : > { %v3403_v3 = vrot.slane %v883_v53, 9  ;;  %v4101_v50 = vpop.f32.mrb[27].mxu0  ;;  %v750_v9 = vmax.f32 %v730_v27, %v732_v58  ;;  %v1268_v63 = vmax.f32 %v3976_v6, %v3400_v17  ;;  %v1269_v13 = vmax.f32 %v3983_v15, %v3401_v59 }
 0x131   : > { %v784_v8 = vrot.slane %v751_v54, 1  ;;  %v1532_v18 = vrot.slane %v1267_v0, %v3943_v33  ;;  %v1270_v20 = vmax.f32 %v3979_v14, %v3402_v2  ;;  %v1272_v22 = vmax.f32 %v3968_v52, %v3404_v7 }
 0x132   : > { %v1271_v21 = vmax.f32 %v883_v53, %v3403_v3  ;;  %v783_v25 = vrot.slane %v750_v9, 1  ;;  %v1358_v31 = vrot.slane %v1268_v63, %v3943_v33  ;;  %v1362_v27 = vrot.slane %v1269_v13, %v3943_v33 }
 0x133   : > { %v4110_v24 = vmax.f32 %v751_v54, %v784_v8  ;;  %v4114_v38 = vpop.f32.mrb[28].mxu0  ;;  %v1552_v6 = vsel %vm1441_vm8, %v1532_v18, %v1551_v57  ;;  %v1366_v15 = vrot.slane %v1270_v20, %v3943_v33  ;;  %v1374_v14 = vrot.slane %v1272_v22, %v3943_v33 }
 0x134   : > { %v1370_v17 = vrot.slane %v1271_v21, %v3943_v33  ;;  %v4120_v41 = vpop.f32.mrb[29].mxu0  ;;  %1569 = vrot.lane.b32.xlu0 %v1552_v6, %s3750_s19  ;;  %v785_v48 = vsel %vm770_vm9, %v783_v25, %v784_v8  ;;  %v1443_v53 = vsel %vm1435_vm4, %v1362_v27, %v1358_v31  ;;  %v899_v58 = vcombine.high %v3968_v52, %v3968_v52 }
 0x135   : > { %v983_v43 = vcombine.high %v4110_v24, %v4110_v24  ;;  %v4126_v46 = vrot.slane %v4110_v24, %v3926_v5  ;;  %v814_v54 = vmax.f32 %v750_v9, %v785_v48  ;;  %v1444_v57 = vsel %vm1437_vm5, %v1366_v15, %v1443_v53 }
 0x136   : > { %v1493_v59 = vsel %vm1435_vm4, %v1366_v15, %v1362_v27  ;;  %v1445_v0 = vsel %vm1439_vm7, %v1370_v17, %v1444_v57  ;;  %vm646_vm14 = vcmp.ge.f32.partialorder %v4041_v4, 0.0  ;;  %v677_v3 = vmul.f32 %v4041_v4, %v3913_v37 }
 0x137   : > { %v1494_v2 = vsel %vm1437_vm5, %v1370_v17, %v1493_v59  ;;  %v966_v7 = vcombine.high %v814_v54, %v814_v54  ;;  %v4141_v8 = vrot.slane %v814_v54, %v3926_v5  ;;  %v4144_v9 = vsel %vm1441_vm8, %v1374_v14, %v1445_v0 }
 0x138   : > { %v3405_v63 = vrot.slane %v899_v58, 9  ;;  %1613 = vrot.lane.b32.xlu1 %v4144_v9, %s3751_s20  ;;  %v1495_v52 = vsel %vm1439_vm7, %v1374_v14, %v1494_v2  ;;  %v707_v13 = vsel %vm646_vm14, %v4041_v4, %v677_v3  ;;  %vm645_vm15 = vcmp.ge.f32.partialorder %v4046_v10, 0.0 }
 0x139   : > { %v676_v18 = vmul.f32 %v3913_v37, %v4046_v10  ;;  %v4154_v20 = vrot.slane %v966_v7, %v3926_v5  ;;  %v4158_v21 = vcombine.high %v4141_v8, %v4141_v8  ;;  %v3421_v22 = vrot.slane %v4141_v8, 9 }
 0x13a   : > { %v1273_v25 = vmax.f32 %v899_v58, %v3405_v63  ;;  %v735_v31 = vmax.f32 %v4071_v32, %v707_v13  ;;  %vm648_vm1 = vcmp.ge.f32.partialorder %v4068_v39, 0.0  ;;  %v679_v4 = vmul.f32 %v4068_v39, %v3913_v37 }
 0x13b   : > { %v706_v27 = vsel %vm645_vm15, %v4046_v10, %v676_v18  ;;  %vm647_vm2 = vcmp.ge.f32.partialorder %v4077_v42, 0.0  ;;  %v678_v53 = vmul.f32 %v3913_v37, %v4077_v42  ;;  %v898_v10 = vrot.slane %v884_v51, %v3926_v5 }
 0x13c   : > { %v1476_v6 = vrot.slane %v1273_v25, %v3943_v33  ;;  %v734_v48 = vmax.f32 %v4090_v49, %v706_v27  ;;  %v4172_v54 = vsel %vm648_vm1, %v4068_v39, %v679_v4  ;;  %v1553_v32 = vsel %vm1435_vm4, %v1370_v17, %v1366_v15 }
 0x13d   : > { %v916_v57 = vcombine.high %v4017_v36, %v4017_v36  ;;  %v737_v58 = vmax.f32 %v707_v13, %v4172_v54  ;;  %v4184_v59 = vsel %vm647_vm2, %v4077_v42, %v678_v53  ;;  %v1554_v39 = vsel %vm1437_vm5, %v1374_v14, %v1553_v32 }
 0x13e   : > { %v1496_v49 = vsel %vm1441_vm8, %v1476_v6, %v1495_v52  ;;  %v736_v44 = vmax.f32 %v706_v27, %v4184_v59  ;;  %v3406_v51 = vrot.slane %v898_v10, 9  ;;  %v1555_v15 = vsel %vm1439_vm7, %v1476_v6, %v1554_v39 }
 0x13f   : > { %1511 = vrot.lane.b32.xlu0 %v1496_v49, %s3749_s18  ;;  %1637 = vrot.lane.b32.xlu1 %v1496_v49, %s3752_s23  ;;  %v932_v17 = vcombine.high %v3997_v30, %v3997_v30  ;;  %v753_v0 = vmax.f32 %v735_v31, %v737_v58  ;;  %v3408_v2 = vrot.slane %v4021_v35, 9  ;;  %v3409_v42 = vrot.slane %v4017_v36, 9 }
 0x140   : > { %v3410_v3 = vrot.slane %v916_v57, 9  ;;  %v752_v14 = vmax.f32 %v734_v48, %v736_v44  ;;  %v1274_v7 = vmax.f32 %v898_v10, %v3406_v51  ;;  %v3411_v63 = vrot.slane %v3997_v30, 9 }
 0x141   : > { %v3412_v52 = vrot.slane %v932_v17, 9  ;;  %v787_v13 = vrot.slane %v753_v0, 1  ;;  %v1276_v18 = vmax.f32 %v4021_v35, %v3408_v2  ;;  %v1277_v25 = vmax.f32 %v4017_v36, %v3409_v42 }
 0x142   : > { %v1278_v27 = vmax.f32 %v916_v57, %v3410_v3  ;;  %v786_v4 = vrot.slane %v752_v14, 1  ;;  %v1536_v6 = vrot.slane %v1274_v7, %v3943_v33  ;;  %v1279_v31 = vmax.f32 %v3997_v30, %v3411_v63 }
 0x143   : > { %v1280_v53 = vmax.f32 %v932_v17, %v3412_v52  ;;  %v4200_v32 = vmax.f32 %v753_v0, %v787_v13  ;;  %v1382_v48 = vrot.slane %v1276_v18, %v3943_v33  ;;  %v1386_v10 = vrot.slane %v1277_v25, %v3943_v33 }
 0x144   : > { %v1390_v49 = vrot.slane %v1278_v27, %v3943_v33  ;;  %v788_v58 = vsel %vm770_vm9, %v786_v4, %v787_v13  ;;  %v1556_v35 = vsel %vm1441_vm8, %v1536_v6, %v1555_v15  ;;  %v1394_v36 = vrot.slane %v1279_v31, %v3943_v33 }
 0x145   : > { %v1480_v57 = vrot.slane %v1280_v53, %v3943_v33  ;;  %v1016_v30 = vcombine.high %v4200_v32, %v4200_v32  ;;  %v4213_v39 = vrot.slane %v4200_v32, %v3926_v5  ;;  %v816_v44 = vmax.f32 %v752_v14, %v788_v58  ;;  %1571 = vrot.lane.b32.xlu1 %v1556_v35, %s3750_s19 }
 0x146   : > { %v1497_v51 = vsel %vm1435_vm4, %v1386_v10, %v1382_v48  ;;  %v1275_v15 = vmax.f32 %v4008_v45, %v3407_v55  ;;  %v931_v0 = vrot.slane %v917_v29, %v3926_v5  ;;  %v1557_v2 = vsel %vm1435_vm4, %v1390_v49, %v1386_v10 }
 0x147   : > { %v1498_v17 = vsel %vm1437_vm5, %v1390_v49, %v1497_v51  ;;  %v999_v42 = vcombine.high %v816_v44, %v816_v44  ;;  %v4227_v3 = vrot.slane %v816_v44, %v3926_v5  ;;  %v1558_v7 = vsel %vm1437_vm5, %v1394_v36, %v1557_v2 }
 0x148   : > { %v1499_v14 = vsel %vm1439_vm7, %v1394_v36, %v1498_v17  ;;  %v1378_v45 = vrot.slane %v1275_v15, %v3943_v33  ;;  %v3413_v55 = vrot.slane %v931_v0, 9  ;;  %v1559_v52 = vsel %vm1439_vm7, %v1480_v57, %v1558_v7 }
 0x149   : > { %v4232_v63 = vsel %vm1441_vm8, %v1480_v57, %v1499_v14  ;;  %v4237_v19 = vrot.slane %v999_v42, %v3926_v5  ;;  %v4241_v29 = vcombine.high %v4227_v3, %v4227_v3  ;;  %v3428_v13 = vrot.slane %v4227_v3, 9  ;;  %1661 = vrot.lane.b32.xlu1 %v1556_v35, %s3753_s24 }
 0x14a   : > { %1639 = vrot.lane.b32.xlu0 %v4232_v63, %s3752_s23  ;;  %vm650_vm3 = vcmp.ge.f32.partialorder %v4097_v62, 0.0  ;;  %v1447_v18 = vsel %vm1435_vm4, %v1382_v48, %v1378_v45  ;;  %v1281_v25 = vmax.f32 %v931_v0, %v3413_v55  ;;  %v681_v27 = vmul.f32 %v4097_v62, %v3913_v37 }
 0x14b   : > { %vm649_vm6 = vcmp.ge.f32.partialorder %v4101_v50, 0.0  ;;  %v1448_v4 = vsel %vm1437_vm5, %v1386_v10, %v1447_v18  ;;  %v680_v6 = vmul.f32 %v3913_v37, %v4101_v50  ;;  %vm652_vm10 = vcmp.ge.f32.partialorder %v4114_v38, 0.0 }
 0x14c   : > { %v683_v31 = vmul.f32 %v4114_v38, %v3913_v37  ;;  %v1449_v53 = vsel %vm1439_vm7, %v1390_v49, %v1448_v4  ;;  %v1540_v48 = vrot.slane %v1281_v25, %v3943_v33  ;;  %v711_v58 = vsel %vm650_vm3, %v4097_v62, %v681_v27 }
 0x14d   : > { %vm651_vm11 = vcmp.ge.f32.partialorder %v4120_v41, 0.0  ;;  %v4265_v10 = vsel %vm1441_vm8, %v1394_v36, %v1449_v53  ;;  %v739_v35 = vmax.f32 %v4172_v54, %v711_v58  ;;  %v710_v57 = vsel %vm649_vm6, %v4101_v50, %v680_v6 }
 0x14e   : > { %1729 = vrot.lane.b32.xlu0 %v4232_v63, %s3754_s25  ;;  %v713_v44 = vsel %vm652_vm10, %v4114_v38, %v683_v31  ;;  %1615 = vrot.lane.b32.xlu1 %v4265_v10, %s3751_s20  ;;  %v1560_v62 = vsel %vm1441_vm8, %v1540_v48, %v1559_v52  ;;  %v738_v49 = vmax.f32 %v4184_v59, %v710_v57  ;;  %v3415_v54 = vrot.slane %v4084_v16, 9 }
 0x14f   : > { %v741_v51 = vmax.f32 %v711_v58, %v713_v44  ;;  %v682_v17 = vmul.f32 %v3913_v37, %v4120_v41  ;;  %v949_v36 = vcombine.high %v4080_v40, %v4080_v40  ;;  %v3416_v50 = vrot.slane %v4080_v40, 9 }
 0x150   : > { %v3418_v38 = vrot.slane %v4052_v12, 9  ;;  %v1282_v59 = vmax.f32 %v4060_v26, %v3414_v34  ;;  %v965_v37 = vcombine.high %v4052_v12, %v4052_v12  ;;  %v1283_v14 = vmax.f32 %v4084_v16, %v3415_v54 }
 0x151   : > { %v755_v15 = vmax.f32 %v739_v35, %v741_v51  ;;  %v712_v0 = vsel %vm651_vm11, %v4120_v41, %v682_v17  ;;  %v3417_v42 = vrot.slane %v949_v36, 9  ;;  %v1284_v7 = vmax.f32 %v4080_v40, %v3416_v50 }
 0x152   : > { %1573 = vrot.lane.b32.xlu0 %v1560_v62, %s3750_s19  ;;  %v740_v2 = vmax.f32 %v710_v57, %v712_v0  ;;  %1705 = vrot.lane.b32.xlu1 %v4265_v10, %s3755_s26  ;;  %v1286_v45 = vmax.f32 %v4052_v12, %v3418_v38  ;;  %v1398_v26 = vrot.slane %v1282_v59, %v3943_v33  ;;  %v3419_v34 = vrot.slane %v965_v37, 9 }
 0x153   : > { %v790_v41 = vrot.slane %v755_v15, 1  ;;  %v1285_v52 = vmax.f32 %v949_v36, %v3417_v42  ;;  %v1402_v18 = vrot.slane %v1283_v14, %v3943_v33  ;;  %v1406_v25 = vrot.slane %v1284_v7, %v3943_v33 }
 0x154   : > { %v754_v55 = vmax.f32 %v738_v49, %v740_v2  ;;  %v1414_v40 = vrot.slane %v1286_v45, %v3943_v33  ;;  %v1287_v16 = vmax.f32 %v965_v37, %v3419_v34  ;;  %v964_v4 = vrot.slane %v950_v11, %v3926_v5 }
 0x155   : > { %v4298_v27 = vmax.f32 %v755_v15, %v790_v41  ;;  %v1410_v6 = vrot.slane %v1285_v52, %v3943_v33  ;;  %v1451_v31 = vsel %vm1435_vm4, %v1402_v18, %v1398_v26  ;;  %v1501_v53 = vsel %vm1435_vm4, %v1406_v25, %v1402_v18 }
 0x156   : > { %1663 = vrot.lane.b32.xlu0 %v1560_v62, %s3753_s24  ;;  %v789_v12 = vrot.slane %v754_v55, 1  ;;  %1513 = vrot.lane.b32.xlu1 %v4232_v63, %s3749_s18  ;;  %v1452_v1 = vsel %vm1437_vm5, %v1406_v25, %v1451_v31  ;;  %v1484_v11 = vrot.slane %v1287_v16, %v3943_v33  ;;  %v3420_v49 = vrot.slane %v964_v4, 9 }
 0x157   : > { %v1049_v48 = vcombine.high %v4298_v27, %v4298_v27  ;;  %v4313_v58 = vrot.slane %v4298_v27, %v3926_v5  ;;  %v1453_v57 = vsel %vm1439_vm7, %v1410_v6, %v1452_v1  ;;  %v1502_v44 = vsel %vm1437_vm5, %v1410_v6, %v1501_v53 }
 0x158   : > { %v791_v35 = vsel %vm770_vm9, %v789_v12, %v790_v41  ;;  %v4323_v17 = vsel %vm1441_vm8, %v1414_v40, %v1453_v57  ;;  %v1503_v36 = vsel %vm1439_vm7, %v1414_v40, %v1502_v44  ;;  %v1561_v54 = vsel %vm1435_vm4, %v1410_v6, %v1406_v25 }
 0x159   : > { %v818_v51 = vmax.f32 %v754_v55, %v791_v35  ;;  %v1504_v63 = vsel %vm1441_vm8, %v1484_v11, %v1503_v36  ;;  %v1288_v50 = vmax.f32 %v964_v4, %v3420_v49  ;;  %v1562_v38 = vsel %vm1437_vm5, %v1414_v40, %v1561_v54 }
 0x15a   : > { %1617 = vrot.lane.b32.xlu0 %v4323_v17, %s3751_s20  ;;  %v982_v15 = vcombine.high %v4154_v20, %v4154_v20  ;;  %1753 = vrot.lane.b32.xlu1 %v1560_v62, %s3756_s27  ;;  %v1563_v37 = vsel %vm1439_vm7, %v1484_v11, %v1562_v38  ;;  %v3422_v2 = vrot.slane %v4158_v21, 9  ;;  %v3423_v14 = vrot.slane %v4154_v20, 9 }
 0x15b   : > { %v1032_v0 = vcombine.high %v818_v51, %v818_v51  ;;  %v4334_v59 = vrot.slane %v818_v51, %v3926_v5  ;;  %v1544_v42 = vrot.slane %v1288_v50, %v3943_v33  ;;  %v3425_v41 = vrot.slane %v4126_v46, 9 }
 0x15c   : > { %v3424_v7 = vrot.slane %v982_v15, 9  ;;  %v1289_v34 = vmax.f32 %v4141_v8, %v3421_v22  ;;  %v1290_v52 = vmax.f32 %v4158_v21, %v3422_v2  ;;  %v1291_v18 = vmax.f32 %v4154_v20, %v3423_v14 }
 0x15d   : > { %v4343_v45 = vrot.slane %v1032_v0, %v3926_v5  ;;  %v4347_v26 = vcombine.high %v4334_v59, %v4334_v59  ;;  %v3435_v62 = vrot.slane %v4334_v59, 9  ;;  %v1564_v55 = vsel %vm1441_vm8, %v1544_v42, %v1563_v37 }
 0x15e   : > { %1707 = vrot.lane.b32.xlu0 %v4323_v17, %s3755_s26  ;;  %v1292_v25 = vmax.f32 %v982_v15, %v3424_v7  ;;  %1515 = vrot.lane.b32.xlu1 %v1504_v63, %s3749_s18  ;;  %v1293_v40 = vmax.f32 %v4126_v46, %v3425_v41  ;;  %v1418_v16 = vrot.slane %v1289_v34, %v3943_v33  ;;  %v3430_v11 = vrot.slane %v4237_v19, 9 }
 0x15f   : > { %v998_v4 = vcombine.high %v4126_v46, %v4126_v46  ;;  %v997_v8 = vrot.slane %v983_v43, %v3926_v5  ;;  %v1422_v22 = vrot.slane %v1290_v52, %v3943_v33  ;;  %v1426_v21 = vrot.slane %v1291_v18, %v3943_v33 }
 0x160   : > { %v1430_v20 = vrot.slane %v1292_v25, %v3943_v33  ;;  %v1015_v12 = vcombine.high %v4237_v19, %v4237_v19  ;;  %v1434_v6 = vrot.slane %v1293_v40, %v3943_v33  ;;  %v3429_v46 = vrot.slane %v4241_v29, 9 }
 0x161   : > { %v3426_v31 = vrot.slane %v998_v4, 9  ;;  %v3427_v53 = vrot.slane %v997_v8, 9  ;;  %v1455_v24 = vsel %vm1435_vm4, %v1422_v22, %v1418_v16  ;;  %v1505_v43 = vsel %vm1435_vm4, %v1426_v21, %v1422_v22 }
 0x162   : > { %1641 = vrot.lane.b32.xlu0 %v1504_v63, %s3752_s23  ;;  %v1565_v1 = vsel %vm1435_vm4, %v1430_v20, %v1426_v21  ;;  %1575 = vrot.lane.b32.xlu1 %v1564_v55, %s3750_s19  ;;  %v1456_v35 = vsel %vm1437_vm5, %v1426_v21, %v1455_v24  ;;  %v1506_v44 = vsel %vm1437_vm5, %v1430_v20, %v1505_v43  ;;  %v3431_v50 = vrot.slane %v1015_v12, 9 }
 0x163   : > { %v1294_v57 = vmax.f32 %v998_v4, %v3426_v31  ;;  %v1295_v49 = vmax.f32 %v997_v8, %v3427_v53  ;;  %v1457_v51 = vsel %vm1439_vm7, %v1430_v20, %v1456_v35  ;;  %v1507_v36 = vsel %vm1439_vm7, %v1434_v6, %v1506_v44 }
 0x164   : > { %v1566_v54 = vsel %vm1437_vm5, %v1434_v6, %v1565_v1  ;;  %v4386_v38 = vsel %vm1441_vm8, %v1434_v6, %v1457_v51  ;;  %v3432_v37 = vrot.slane %v4213_v39, 9  ;;  %v1296_v2 = vmax.f32 %v4227_v3, %v3428_v13 }
 0x165   : > { %v1488_v15 = vrot.slane %v1294_v57, %v3943_v33  ;;  %v1548_v0 = vrot.slane %v1295_v49, %v3943_v33  ;;  %v1297_v42 = vmax.f32 %v4241_v29, %v3429_v46  ;;  %v1298_v14 = vmax.f32 %v4237_v19, %v3430_v11 }
 0x166   : > { %1731 = vrot.lane.b32.xlu0 %v1504_v63, %s3754_s25  ;;  %v1299_v7 = vmax.f32 %v1015_v12, %v3431_v50  ;;  %1755 = vrot.lane.b32.xlu1 %v1564_v55, %s3756_s27  ;;  %v1300_v52 = vmax.f32 %v4213_v39, %v3432_v37  ;;  %v1031_v63 = vcombine.high %v4213_v39, %v4213_v39  ;;  %v3436_v22 = vrot.slane %v4347_v26, 9 }
 0x167   : > { %v1508_v41 = vsel %vm1441_vm8, %v1488_v15, %v1507_v36  ;;  %v1567_v34 = vsel %vm1439_vm7, %v1488_v15, %v1566_v54  ;;  %v1592_v3 = vrot.slane %v1296_v2, %v3943_v33  ;;  %v1596_v29 = vrot.slane %v1297_v42, %v3943_v33 }
 0x168   : > { %v4404_v18 = vsel %vm1441_vm8, %v1548_v0, %v1567_v34  ;;  %v1600_v19 = vrot.slane %v1298_v14, %v3943_v33  ;;  %v1604_v13 = vrot.slane %v1299_v7, %v3943_v33  ;;  %v1608_v25 = vrot.slane %v1300_v52, %v3943_v33 }
 0x169   : > { %v3433_v40 = vrot.slane %v1031_v63, 9  ;;  %v1030_v16 = vrot.slane %v1016_v30, %v3926_v5  ;;  %v1609_v39 = vsel %vm1435_vm4, %v1596_v29, %v1592_v3  ;;  %v1048_v8 = vcombine.high %v4343_v45, %v4343_v45 }
 0x16a   : > { %1665 = vrot.lane.b32.xlu0 %v1564_v55, %s3753_s24  ;;  %v1633_v4 = vsel %vm1435_vm4, %v1600_v19, %v1596_v29  ;;  %1619 = vrot.lane.b32.xlu1 %v4386_v38, %s3751_s20  ;;  %v1610_v21 = vsel %vm1437_vm5, %v1600_v19, %v1609_v39  ;;  %v1657_v6 = vsel %vm1435_vm4, %v1604_v13, %v1600_v19  ;;  %v3437_v31 = vrot.slane %v4343_v45, 9  ;;  %v2025_v39 = vld [vmem:[%s4920_s2 + $0x18] sm:$0xff] }
 0x16b   : > { %v1301_v20 = vmax.f32 %v1031_v63, %v3433_v40  ;;  %v1634_v32 = vsel %vm1437_vm5, %v1604_v13, %v1633_v4  ;;  %v3434_v30 = vrot.slane %v1030_v16, 9  ;;  %v1611_v55 = vsel %vm1439_vm7, %v1604_v13, %v1610_v21  ;;  %v2023_v40 = vld [vmem:[%s4920_s2 + $0x8] sm:$0xff] }
 0x16c   : > { %v1635_v12 = vsel %vm1439_vm7, %v1608_v25, %v1634_v32  ;;  %v1612_v53 = vsel %vm1441_vm8, %v1608_v25, %v1611_v55  ;;  %v1658_v43 = vsel %vm1437_vm5, %v1608_v25, %v1657_v6  ;;  %v3438_v1 = vrot.slane %v1048_v8, 9  ;;  %v2022_v25 = vld [vmem:[%s4920_s2] sm:$0xff]  ;;  %v2027_v32 = vld [vmem:[%s4920_s2 + $0x28] sm:$0xff] }
 0x16d   : > { %v1632_v46 = vrot.slane %v1301_v20, %v3943_v33  ;;  %v1302_v24 = vmax.f32 %v1030_v16, %v3434_v30  ;;  %v3439_v11 = vrot.slane %v4313_v58, 9  ;;  %v1303_v35 = vmax.f32 %v4334_v59, %v3435_v62  ;;  %v2024_v16 = vld [vmem:[%s4920_s2 + $0x10] sm:$0xff] }
 0x16e   : > { %1643 = vrot.lane.b32.xlu0 %v1508_v41, %s3752_s23  ;;  %v1304_v57 = vmax.f32 %v4347_v26, %v3436_v22  ;;  %1709 = vrot.lane.b32.xlu1 %v4386_v38, %s3755_s26  ;;  %v1305_v36 = vmax.f32 %v4343_v45, %v3437_v31  ;;  %v1306_v54 = vmax.f32 %v1048_v8, %v3438_v1  ;;  %v2028_v30 = vld [vmem:[%s4920_s2 + $0x30] sm:$0xff]  ;;  %v2030_v31 = vld [vmem:[%s4920_s2 + $0x40] sm:$0xff]  ;;  %vm2204_vm9 = vcmask 1042432  }
 0x16f   : > { %v1636_v44 = vsel %vm1441_vm8, %v1632_v46, %v1635_v12  ;;  %v1656_v49 = vrot.slane %v1302_v24, %v3943_v33  ;;  %v1659_v51 = vsel %vm1439_vm7, %v1632_v46, %v1658_v43  ;;  %v1307_v50 = vmax.f32 %v4313_v58, %v3439_v11  ;;  %v2029_v12 = vld [vmem:[%s4920_s2 + $0x38] sm:$0xff]  ;;  %v2032_v24 = vld [vmem:[%s4920_s2 + $0x50] sm:$0xff] }
 0x170   : > { %v1684_v15 = vrot.slane %v1303_v35, %v3943_v33  ;;  %v1688_v59 = vrot.slane %v1304_v57, %v3943_v33  ;;  %v1692_v62 = vrot.slane %v1305_v36, %v3943_v33  ;;  %v1064_v0 = vcombine.high %v4313_v58, %v4313_v58  ;;  %v2033_v43 = vld [vmem:[%s4920_s2 + $0x58] sm:$0x7] }
 0x171   : > { %v1660_v26 = vsel %vm1441_vm8, %v1656_v49, %v1659_v51  ;;  %v1063_v37 = vrot.slane %v1049_v48, %v3926_v5  ;;  %v1696_v45 = vrot.slane %v1306_v54, %v3943_v33  ;;  %v1700_v2 = vrot.slane %v1307_v50, %v3943_v33 }
 0x172   : > { %1733 = vrot.lane.b32.xlu0 %v1508_v41, %s3754_s25  ;;  %v1701_v42 = vsel %vm1435_vm4, %v1688_v59, %v1684_v15  ;;  %1517 = vrot.lane.b32.xlu1 %v1508_v41, %s3749_s18  ;;  %v3440_v7 = vrot.slane %v1064_v0, 9  ;;  %v1725_v58 = vsel %vm1435_vm4, %v1692_v62, %v1688_v59  ;;  %v3620_v21 = vpack.c.bf16 %v2023_v40, %v2022_v25  ;;  %s263_s18 = scalar_lea.vmem %s4924_s6, %s3358_s15 }
 0x173   : > { %v1702_v14 = vsel %vm1437_vm5, %v1692_v62, %v1701_v42  ;;  %v3441_v34 = vrot.slane %v1063_v37, 9  ;;  %v1726_v5 = vsel %vm1437_vm5, %v1696_v45, %v1725_v58  ;;  %v1749_v27 = vsel %vm1435_vm4, %v1696_v45, %v1692_v62 }
 0x174   : > { %v1703_v52 = vsel %vm1439_vm7, %v1696_v45, %v1702_v14  ;;  %v1308_v63 = vmax.f32 %v1064_v0, %v3440_v7  ;;  %v1727_v3 = vsel %vm1439_vm7, %v1700_v2, %v1726_v5  ;;  %v1750_v41 = vsel %vm1437_vm5, %v1700_v2, %v1749_v27  ;;  %3621 = vmatprep.subr.bf16.mxu1 %v3620_v21 }
 0x175   : > { %v1704_v48 = vsel %vm1441_vm8, %v1700_v2, %v1703_v52  ;;  %v1309_v29 = vmax.f32 %v1063_v37, %v3441_v34  ;;  %v3624_v20 = vpack.c.bf16 %v2025_v39, %v2024_v16  ;;  %3623 = vmatpush3.bf16.msra.mxu1 %v3620_v21  ;;  %v3632_v6 = vpack.c.bf16 %v2029_v12, %v2028_v30 }
 0x176   : > { %1577 = vrot.lane.b32.xlu0 %v4404_v18, %s3750_s19  ;;  %1667 = vrot.lane.b32.xlu1 %v4404_v18, %s3753_s24  ;;  %v1724_v19 = vrot.slane %v1308_v63, %v3943_v33  ;;  %v3640_v1 = vpack.c.bf16 %v2033_v43, %v2032_v24  ;;  %vm3757_vm12 = vmmov 1   ;;  %v3393_v57 = vrot.slane %v3939_v28, 9  ;;  %s3764_s19 = smov 112  }
 0x177   : > { %v1748_v13 = vrot.slane %v1309_v29, %v3943_v33  ;;  %3625 = vmatprep.subr.bf16.mxu1 %v3624_v20  ;;  %vm3641_vm13 = vmpackc.low %vm2204_vm9, %vm3757_vm12  ;;  %vm1768_vm14 = vcmask 80896   ;;  %vm1774_vm15 = vcmask 162816   ;;  %vm1780_vm1 = vcmask 244736  }
 0x178   : > { %v1728_v4 = vsel %vm1441_vm8, %v1724_v19, %v1727_v3  ;;  %v1751_v8 = vsel %vm1439_vm7, %v1724_v19, %v1750_v41  ;;  %v1261_v51 = vmax.f32 %v3939_v28, %v3393_v57  ;;  %v3758_v28 = vmov 1966171168  }
 0x179   : > { %v1752_v22 = vsel %vm1441_vm8, %v1748_v13, %v1751_v8  ;;  %3627 = vmatpush3.bf16.msra.mxu1 %v3624_v20  ;;  %v1829_v2 = vunpack.c.l.s4 %v3758_v28  ;;  %vm1810_vm2 = vcmask 654336   ;;  %vm1816_vm3 = vcmask 736256  }
 0x17a   : > { %1757 = vrot.lane.b32.xlu0 %v4404_v18, %s3756_s27  ;;  %1711 = vrot.lane.b32.xlu1 %v1612_v53, %s3755_s26  ;;  %v2026_v18 = vld [vmem:[%s4920_s2 + $0x20] sm:$0xff]  ;;  %v1338_v50 = vrot.slane %v1261_v51, %v3943_v33  ;;  %vm2195_vm6 = vcmask 744448  }
 0x17b   : > { %v3628_v55 = vpack.c.bf16 %v2027_v32, %v2026_v18 }
 0x17c   : > { %v1436_v15 = vsel %vm1435_vm4, %v4014_v56, %v1338_v50  ;;  %vm1786_vm4 = vcmask 326656  }
 0x17d   : > { %3629 = vmatprep.subr.bf16.mxu1 %v3628_v55  ;;  %v1438_v62 = vsel %vm1437_vm5, %v4025_v23, %v1436_v15  ;;  %vm1792_vm5 = vcmask 408576  }
 0x17e   : > { %1621 = vrot.lane.b32.xlu0 %v1612_v53, %s3751_s20  ;;  %1645 = vrot.lane.b32.xlu1 %v1636_v44, %s3752_s23  ;;  %v2031_v53 = vld [vmem:[%s4920_s2 + $0x48] sm:$0xff]  ;;  %v1440_v37 = vsel %vm1439_vm7, %v4028_v47, %v1438_v62  ;;  %vm1798_vm7 = vcmask 490496   ;;  %v1830_v47 = vunpack.c.0.s8 %v1829_v2 }
 0x17f   : > { %3631 = vmatpush3.bf16.msra.mxu1 %v3628_v55  ;;  %v3636_v46 = vpack.c.bf16 %v2031_v53, %v2030_v31  ;;  %v1442_v33 = vsel %vm1441_vm8, %v4031_v61, %v1440_v37  ;;  %vm1804_vm8 = vcmask 572416  }
 0x180   : > { %3633 = vmatprep.subr.bf16.mxu1 %v3632_v6  ;;  %v4542_v27 = vsub.s32 %v1830_v47, %v3921_v60 }
 0x182   : > { %1735 = vrot.lane.b32.xlu0 %v1636_v44, %s3754_s25  ;;  %1669 = vrot.lane.b32.xlu1 %v1660_v26, %s3753_s24 }
 0x183   : > { %3635 = vmatpush3.bf16.msra.mxu1 %v3632_v6 }
 0x184   : > { %3637 = vmatprep.subr.bf16.mxu1 %v3636_v46 }
 0x186   : > { %1759 = vrot.lane.b32.xlu0 %v1660_v26, %s3756_s27  ;;  %1713 = vrot.lane.b32.xlu1 %v1704_v48, %s3755_s26 }
 0x187   : > { %3639 = vmatpush3.bf16.msra.mxu1 %v3636_v46 }
 0x188   : > { %3642 = vmatprep.subr.msk.bf16.mxu1 %vm3641_vm13, %v3640_v1 }
 0x18a   : > { %1737 = vrot.lane.b32.xlu0 %v1728_v4, %s3754_s25  ;;  %1761 = vrot.lane.b32.xlu1 %v1752_v22, %s3756_s27  ;;  %s3359_s25 = sld [smem:[#allocation2 + $0x1]] }
 0x18b   : > { %3645 = vmatpush3.bf16.msk.msra.mxu1 %vm3641_vm13, %v3640_v1  ;;  %vm3106_vm13 = vcmask 1040384  }
 0x19c   : > { %v1510_v11 = vpop.permute.xlu0 %1509 }
 0x19d   : > { %v1769_v56 = vsel %vm1768_vm14, %v1442_v33, %v1510_v11 }
 0x1a6   : > { %v1570_v44 = vpop.permute.xlu0 %1569 }
 0x1a7   : > { %v1775_v23 = vsel %vm1774_vm15, %v1769_v56, %v1570_v44 }
 0x1aa   : > { %v1614_v35 = vpop.permute.xlu1 %1613 }
 0x1ab   : > { %v1781_v7 = vsel %vm1780_vm1, %v1775_v23, %v1614_v35 }
 0x1b1   : > { %v1638_v49 = vpop.permute.xlu1 %1637  ;;  %v1512_v36 = vpop.permute.xlu0 %1511 }
 0x1b2   : > { %v1787_v58 = vsel %vm1786_vm4, %v1781_v7, %v1638_v49  ;;  %v1770_v25 = vsel %vm1768_vm14, %v4144_v9, %v1512_v36 }
 0x1b7   : > { %v1572_v54 = vpop.permute.xlu1 %1571 }
 0x1b8   : > { %v1776_v16 = vsel %vm1774_vm15, %v1770_v25, %v1572_v54 }
 0x1bb   : > { %v1662_v26 = vpop.permute.xlu1 %1661 }
 0x1bc   : > { %v1640_v59 = vpop.permute.xlu0 %1639  ;;  %v1793_v52 = vsel %vm1792_vm5, %v1787_v58, %v1662_v26 }
 0x1c0   : > { %v1730_v0 = vpop.permute.xlu0 %1729  ;;  %v1616_v45 = vpop.permute.xlu1 %1615 }
 0x1c1   : > { %v1782_v60 = vsel %vm1780_vm1, %v1776_v16, %v1616_v45 }
 0x1c2   : > { %v1788_v22 = vsel %vm1786_vm4, %v1782_v60, %v1640_v59 }
 0x1c4   : > { %v1574_v42 = vpop.permute.xlu0 %1573  ;;  %v1706_v14 = vpop.permute.xlu1 %1705 }
 0x1c5   : > { %v1799_v61 = vsel %vm1798_vm7, %v1793_v52, %v1706_v14 }
 0x1c6   : > { %v1805_v63 = vsel %vm1804_vm8, %v1799_v61, %v1730_v0 }
 0x1c8   : > { %v1664_v34 = vpop.permute.xlu0 %1663  ;;  %v1514_v5 = vpop.permute.xlu1 %1513 }
 0x1c9   : > { %v1794_v20 = vsel %vm1792_vm5, %v1788_v22, %v1664_v34  ;;  %v1771_v49 = vsel %vm1768_vm14, %v4265_v10, %v1514_v5 }
 0x1ca   : > { %v1777_v0 = vsel %vm1774_vm15, %v1771_v49, %v1574_v42 }
 0x1cc   : > { %v1618_v48 = vpop.permute.xlu0 %1617  ;;  %v1754_v3 = vpop.permute.xlu1 %1753 }
 0x1cd   : > { %v1811_v29 = vsel %vm1810_vm2, %v1805_v63, %v1754_v3  ;;  %v1783_v33 = vsel %vm1780_vm1, %v1777_v0, %v1618_v48 }
 0x1ce   : > { %v1817_v41 = vsel %vm1816_vm3, %v1811_v29, 1.0 }
 0x1cf   : > { %v1834_v19 = vrot.slane %v1817_v41, %v4542_v27  ;;  %v1827_v21 = vcombine.high %v1817_v41, %v1817_v41 }
 0x1d0   : > { %v1708_v13 = vpop.permute.xlu0 %1707  ;;  %v1516_v40 = vpop.permute.xlu1 %1515 }
 0x1d1   : > { %v1842_v39 = vcombine.high %v1834_v19, %v1834_v19  ;;  %v1800_v32 = vsel %vm1798_vm7, %v1794_v20, %v1708_v13  ;;  %v1849_v9 = vrot.slane %v1834_v19, %v4542_v27  ;;  %v1841_v6 = vrot.slane %v1827_v21, %v4542_v27 }
 0x1d2   : > { %v1772_v19 = vsel %vm1768_vm14, %v4323_v17, %v1516_v40 }
 0x1d3   : > { %v1863_v18 = vrot.slane %v1842_v39, %v4542_v27  ;;  %v1856_v35 = vrot.slane %v1841_v6, %v4542_v27 }
 0x1d4   : > { %v1642_v4 = vpop.permute.xlu0 %1641  ;;  %v1576_v8 = vpop.permute.xlu1 %1575 }
 0x1d5   : > { %v2034_v53 = vcombine.low %v1849_v9, %v1863_v18  ;;  %v3442_v24 = vcombine.high %v1849_v9, %v1863_v18  ;;  %v1789_v14 = vsel %vm1786_vm4, %v1783_v33, %v1642_v4  ;;  %v1778_v25 = vsel %vm1774_vm15, %v1772_v19, %v1576_v8 }
 0x1d7   : > { %v2044_v51 = vrot.slane %v2034_v53, %v4542_v27  ;;  %v2051_v59 = vrot.slane %v3442_v24, %v4542_v27 }
 0x1d8   : > { %v1732_v30 = vpop.permute.xlu0 %1731  ;;  %v1756_v12 = vpop.permute.xlu1 %1755 }
 0x1d9   : > { %v1806_v55 = vsel %vm1804_vm8, %v1800_v32, %v1732_v30  ;;  %v2066_v2 = vcombine.low %v2044_v51, %v2051_v59 }
 0x1da   : > { %v1812_v31 = vsel %vm1810_vm2, %v1806_v55, %v1756_v12 }
 0x1db   : > { %v1818_v46 = vsel %vm1816_vm3, %v1812_v31, 1.0  ;;  %v2074_v47 = vrot.slane %v2066_v2, %v4542_v27 }
 0x1dc   : > { %v1873_v43 = vrot.slane %v1818_v46, %v4542_v27  ;;  %v1666_v1 = vpop.permute.xlu0 %1665  ;;  %v1620_v11 = vpop.permute.xlu1 %1619  ;;  %v1866_v29 = vcombine.high %v1818_v46, %v1818_v46 }
 0x1dd   : > { %v1795_v23 = vsel %vm1792_vm5, %v1789_v14, %v1666_v1  ;;  %v1784_v39 = vsel %vm1780_vm1, %v1778_v25, %v1620_v11 }
 0x1de   : > { %v1881_v57 = vcombine.high %v1873_v43, %v1873_v43  ;;  %v1888_v44 = vrot.slane %v1873_v43, %v4542_v27  ;;  %v1880_v4 = vrot.slane %v1866_v29, %v4542_v27 }
 0x1e0   : > { %v1902_v36 = vrot.slane %v1881_v57, %v4542_v27  ;;  %v1903_v54 = vcombine.high %v1888_v44, %v1888_v44  ;;  %v2036_v50 = vcombine.low %v1856_v35, %v1888_v44  ;;  %v1644_v15 = vpop.permute.xlu0 %1643  ;;  %v1710_v26 = vpop.permute.xlu1 %1709  ;;  %v1895_v55 = vrot.slane %v1880_v4, %v4542_v27 }
 0x1e1   : > { %v1801_v42 = vsel %vm1798_vm7, %v1795_v23, %v1710_v26  ;;  %v1790_v32 = vsel %vm1786_vm4, %v1784_v39, %v1644_v15 }
 0x1e2   : > { %v2037_v62 = vcombine.low %v1902_v36, %v1903_v54  ;;  %v2058_v45 = vrot.slane %v2036_v50, %v4542_v27  ;;  %v1904_v17 = vcombine.high %v1902_v36, %v1902_v36 }
 0x1e4   : > { %v1734_v37 = vpop.permute.xlu0 %1733  ;;  %v2065_v28 = vrot.slane %v2037_v62, %v4542_v27  ;;  %v1518_v10 = vpop.permute.xlu1 %1517  ;;  %v2083_v35 = vcombine.low %v1904_v17, %v1895_v55 }
 0x1e5   : > { %v1807_v5 = vsel %vm1804_vm8, %v1801_v42, %v1734_v37  ;;  %v1773_v22 = vsel %vm1768_vm14, %v4386_v38, %v1518_v10  ;;  %vm2885_vm14 = vcmask 130048  }
 0x1e6   : > { %v2067_v56 = vcombine.low %v2058_v45, %v2065_v28  ;;  %v2093_v45 = vrot.slane %v2083_v35, %v4542_v27 }
 0x1e8   : > { %v1578_v7 = vpop.permute.xlu0 %1577  ;;  %v2081_v58 = vrot.slane %v2067_v56, %v4542_v27  ;;  %v1668_v34 = vpop.permute.xlu1 %1667 }
 0x1e9   : > { %v1779_v40 = vsel %vm1774_vm15, %v1773_v22, %v1578_v7  ;;  %v1796_v8 = vsel %vm1792_vm5, %v1790_v32, %v1668_v34  ;;  %vm2892_vm15 = vcmask 392192  }
 0x1ea   : > { %v2082_v52 = vcombine.low %v2074_v47, %v2081_v58 }
 0x1ec   : > { %v1758_v61 = vpop.permute.xlu0 %1757  ;;  %3599 = vmatprep.mubr.msk.f32.mxu1 %vm2195_vm6, %v2082_v52  ;;  %v1712_v63 = vpop.permute.xlu1 %1711 }
 0x1ed   : > { %v1813_v48 = vsel %vm1810_vm2, %v1807_v5, %v1758_v61  ;;  %v1802_v12 = vsel %vm1798_vm7, %v1796_v8, %v1712_v63 }
 0x1ee   : > { %v1819_v3 = vsel %vm1816_vm3, %v1813_v48, 1.0 }
 0x1ef   : > { %v1912_v41 = vrot.slane %v1819_v3, %v4542_v27  ;;  %v1905_v21 = vcombine.high %v1819_v3, %v1819_v3 }
 0x1f0   : > { %v1622_v13 = vpop.permute.xlu0 %1621  ;;  %v1646_v60 = vpop.permute.xlu1 %1645 }
 0x1f1   : > { %v1920_v16 = vcombine.high %v1912_v41, %v1912_v41  ;;  %v1927_v9 = vrot.slane %v1912_v41, %v4542_v27  ;;  %v1785_v38 = vsel %vm1780_vm1, %v1779_v40, %v1622_v13  ;;  %v1919_v6 = vrot.slane %v1905_v21, %v4542_v27 }
 0x1f2   : > { %v1791_v53 = vsel %vm1786_vm4, %v1785_v38, %v1646_v60  ;;  %vm2896_vm1 = vcmask 523264   ;;  %vm2903_vm4 = vcmask 785408  }
 0x1f3   : > { %v1941_v20 = vrot.slane %v1920_v16, %v4542_v27  ;;  %v1934_v36 = vrot.slane %v1919_v6, %v4542_v27 }
 0x1f4   : > { %v1736_v18 = vpop.permute.xlu0 %1735  ;;  %v1670_v30 = vpop.permute.xlu1 %1669 }
 0x1f5   : > { %v2084_v31 = vcombine.low %v1927_v9, %v1941_v20  ;;  %v1808_v46 = vsel %vm1804_vm8, %v1802_v12, %v1736_v18  ;;  %v1797_v43 = vsel %vm1792_vm5, %v1791_v53, %v1670_v30  ;;  %v3443_v54 = vcombine.high %v1927_v9, %v1941_v20 }
 0x1f6   : > { %v2297_v9 = vstv %s3359_s25  ;;  %vm2907_vm5 = vcmask 916480  }
 0x1f7   : > { %v2100_v50 = vrot.slane %v2084_v31, %v4542_v27  ;;  %v2107_v33 = vrot.slane %v3443_v54, %v4542_v27 }
 0x1f8   : > { %v1760_v24 = vpop.permute.xlu0 %1759  ;;  %v1714_v11 = vpop.permute.xlu1 %1713 }
 0x1f9   : > { %v1814_v1 = vsel %vm1810_vm2, %v1808_v46, %v1760_v24  ;;  %v1803_v44 = vsel %vm1798_vm7, %v1797_v43, %v1714_v11  ;;  %v2115_v23 = vcombine.low %v2093_v45, %v2100_v50  ;;  %vm3101_vm7 = vcmask 138240  }
 0x1fa   : > { %v1820_v57 = vsel %vm1816_vm3, %v1814_v1, 1.0 }
 0x1fb   : > { %v1944_v49 = vcombine.high %v1820_v57, %v1820_v57  ;;  %v1951_v51 = vrot.slane %v1820_v57, %v4542_v27  ;;  %v2123_v3 = vrot.slane %v2115_v23, %v4542_v27 }
 0x1fc   : > { %v1738_v15 = vpop.permute.xlu0 %1737  ;;  %v1762_v37 = vpop.permute.xlu1 %1761 }
 0x1fd   : > { %v1958_v59 = vrot.slane %v1944_v49, %v4542_v27  ;;  %v1959_v26 = vcombine.high %v1951_v51, %v1951_v51  ;;  %v1966_v62 = vrot.slane %v1951_v51, %v4542_v27  ;;  %v1809_v0 = vsel %vm1804_vm8, %v1803_v44, %v1738_v15 }
 0x1fe   : > { %v1815_v28 = vsel %vm1810_vm2, %v1809_v0, %v1762_v37  ;;  %vm3767_vm8 = vmmov 0  }
 0x1ff   : > { %v1980_v2 = vrot.slane %v1959_v26, %v4542_v27  ;;  %v2086_v10 = vcombine.low %v1934_v36, %v1966_v62  ;;  %v1981_v56 = vcombine.high %v1966_v62, %v1966_v62  ;;  %v1821_v14 = vsel %vm1816_vm3, %v1815_v28, 1.0 }
 0x200   : > { %v1973_v7 = vrot.slane %v1958_v59, %v4542_v27  ;;  %v1983_v42 = vcombine.high %v1821_v14, %v1821_v14  ;;  %v1990_v34 = vrot.slane %v1821_v14, %v4542_v27 }
 0x201   : > { %v1982_v47 = vcombine.high %v1980_v2, %v1980_v2  ;;  %v2114_v58 = vrot.slane %v2086_v10, %v4542_v27  ;;  %v2132_v61 = vcombine.low %v1980_v2, %v1981_v56 }
 0x202   : > { %v1998_v48 = vcombine.high %v1990_v34, %v1990_v34  ;;  %v1997_v63 = vrot.slane %v1983_v42, %v4542_v27  ;;  %v2005_v19 = vrot.slane %v1990_v34, %v4542_v27 }
 0x203   : > { %v2133_v52 = vcombine.low %v1982_v47, %v1973_v7  ;;  %v2116_v5 = vcombine.low %v2107_v33, %v2114_v58  ;;  %v2142_v16 = vrot.slane %v2132_v61, %v4542_v27 }
 0x204   : > { %v2019_v13 = vrot.slane %v1998_v48, %v4542_v27  ;;  %v2012_v4 = vrot.slane %v1997_v63, %v4542_v27 }
 0x205   : > { %v2130_v29 = vrot.slane %v2116_v5, %v4542_v27  ;;  %v2149_v41 = vrot.slane %v2133_v52, %v4542_v27 }
 0x206   : > { %v2134_v60 = vcombine.low %v2005_v19, %v2019_v13  ;;  %v3444_v39 = vcombine.high %v2005_v19, %v2019_v13  ;;  %v2187_v32 = vrot.slane %v2012_v4, %v4542_v27 }
 0x207   : > { %v2131_v25 = vcombine.low %v2123_v3, %v2130_v29  ;;  %v2164_v20 = vcombine.low %v2142_v16, %v2149_v41 }
 0x208   : > { %v2156_v22 = vrot.slane %v2134_v60, %v4542_v27  ;;  %v2163_v21 = vrot.slane %v3444_v39, %v4542_v27  ;;  %v2194_v8 = vrot.slane %v2187_v32, %v4542_v27 }
 0x209   : > { %3600 = vmatmul.mubr.msk.f32.vlgmr.msra.gmra.mrb[0].mxu1 %vm2195_vm6, %v2131_v25  ;;  %v2172_v30 = vrot.slane %v2164_v20, %v4542_v27 }
 0x20a   : > { %v2165_v18 = vcombine.low %v2156_v22, %v2163_v21 }
 0x20c   : > { %v2179_v17 = vrot.slane %v2165_v18, %v4542_v27 }
 0x20e   : > { %v2180_v40 = vcombine.low %v2172_v30, %v2179_v17 }
 0x210   : > { %3602 = vmatprep.mubr.msk.f32.mxu1 %vm2195_vm6, %v2180_v40 }
 0x211   : > { %3603 = vmatmul.mubr.msk.f32.gmra.mrb[2].mxu1 %vm2195_vm6, %v2194_v8  ;;  %vm3195_vm6 = vcmask 269312  }
 0x2dc   : > { %v3601_v55 = vpop.f32.mrb[0].mxu1 }
 0x2dd   : > { %vm2294_vm10 = vcmp.ge.f32.partialorder %v3601_v55, 0.0  ;;  %v2299_v12 = vmul.f32 %v3601_v55, %v2297_v9  ;;  %v2274_v38 = vpop.f32.mrb[1].mxu1 }
 0x2de   : > { %vm2293_vm11 = vcmp.ge.f32.partialorder %v2274_v38, 0.0  ;;  %v2298_v6 = vmul.f32 %v2297_v9, %v2274_v38 }
 0x2df   : > { %v2303_v31 = vsel %vm2294_vm10, %v3601_v55, %v2299_v12  ;;  %vm3675_vm10 = vmpackc.low %vm3195_vm6, %vm3195_vm6 }
 0x2e0   : > { %v2359_v53 = vcombine.high %v2303_v31, %v2303_v31  ;;  %v2366_v46 = vrot.slane %v2303_v31, %v4542_v27  ;;  %v2302_v24 = vsel %vm2293_vm11, %v2274_v38, %v2298_v6 }
 0x2e1   : > { %v2310_v43 = vcombine.high %v2302_v24, %v2302_v24  ;;  %v2317_v1 = vrot.slane %v2302_v24, %v4542_v27 }
 0x2e2   : > { %v2373_v11 = vrot.slane %v2359_v53, %v4542_v27  ;;  %v2374_v35 = vcombine.high %v2366_v46, %v2366_v46  ;;  %v4644_v51 = vrot.slane %v2366_v46, %v4542_v27 }
 0x2e3   : > { %v2324_v57 = vrot.slane %v2310_v43, %v4542_v27  ;;  %v2325_v44 = vcombine.high %v2317_v1, %v2317_v1  ;;  %v4641_v49 = vrot.slane %v2317_v1, %v4542_v27 }
 0x2e4   : > { %v2389_v36 = vrot.slane %v2373_v11, %v4542_v27  ;;  %v4648_v54 = vrot.slane %v2374_v35, %v4542_v27  ;;  %v2375_v50 = vcombine.high %v2373_v11, %v2373_v11  ;;  %v3604_v62 = vpop.f32.mrb[2].mxu1  ;;  %v2580_v40 = vrot.slane %v4644_v51, %v4542_v27 }
 0x2e5   : > { %v4651_v15 = vrot.slane %v2325_v44, %v4542_v27  ;;  %v4655_v59 = vcombine.high %v4641_v49, %v4641_v49  ;;  %v2326_v26 = vcombine.high %v2324_v57, %v2324_v57  ;;  %vm2296_vm9 = vcmp.ge.f32.partialorder %v3604_v62, 0.0  ;;  %v2284_v2 = vpop.f32.mrb[3].mxu1 }
 0x2e6   : > { %v3450_v0 = vcombine.high %v4644_v51, %v4648_v54  ;;  %v2406_v37 = vcombine.high %v4648_v54, %v4648_v54  ;;  %v2301_v28 = vmul.f32 %v3604_v62, %v2297_v9  ;;  %v2531_v10 = vrot.slane %v2389_v36, %v4542_v27 }
 0x2e7   : > { %v2471_v45 = vcombine.low %v4641_v49, %v4651_v15  ;;  %vm2295_vm12 = vcmp.ge.f32.partialorder %v2284_v2, 0.0  ;;  %v2300_v33 = vmul.f32 %v2297_v9, %v2284_v2  ;;  %v2357_v14 = vcombine.high %v4651_v15, %v4651_v15 }
 0x2e8   : > { %v2524_v56 = vrot.slane %v3450_v0, %v4542_v27  ;;  %v2403_v23 = vrot.slane %v2375_v50, %v4542_v27  ;;  %v4668_v7 = vsel %vm2296_vm9, %v3604_v62, %v2301_v28  ;;  %v2543_v47 = vcombine.low %v4651_v15, %v4655_v59 }
 0x2e9   : > { %v2589_v58 = vcombine.low %v2406_v37, %v2389_v36  ;;  %v2340_v42 = vrot.slane %v2324_v57, %v4542_v27  ;;  %v2304_v34 = vsel %vm2295_vm12, %v2284_v2, %v2300_v33  ;;  %v2557_v5 = vrot.slane %v2357_v14, %v4542_v27  ;;  %v2993_v14 = vld [vmem:[%s4921_s3 + $0x8] sm:$0xff] }
 0x2ea   : > { %v2532_v52 = vcombine.low %v2524_v56, %v2531_v10  ;;  %v2415_v61 = vrot.slane %v2304_v34, %v4542_v27  ;;  %v2550_v48 = vrot.slane %v2543_v47, %v4542_v27  ;;  %v3452_v29 = vcombine.high %v4641_v49, %v4651_v15  ;;  %v2992_v56 = vld [vmem:[%s4921_s3] sm:$0xff]  ;;  %v2994_v49 = vld [vmem:[%s4921_s3 + $0x10] sm:$0xff]  ;;  %v2995_v15 = vld [vmem:[%s4921_s3 + $0x18] sm:$0xff] }
 0x2eb   : > { %v2596_v63 = vrot.slane %v2589_v58, %v4542_v27  ;;  %v2354_v41 = vrot.slane %v2326_v26, %v4542_v27  ;;  %v2603_v13 = vrot.slane %v2403_v23, %v4542_v27  ;;  %v2635_v60 = vrot.slane %v2340_v42, %v4542_v27 }
 0x2ec   : > { %v4678_v3 = vrot.slane %v2532_v52, %v4542_v27  ;;  %v2558_v19 = vcombine.low %v2550_v48, %v2557_v5  ;;  %v2423_v25 = vcombine.high %v2415_v61, %v2415_v61  ;;  %v2628_v16 = vrot.slane %v3452_v29, %v4542_v27 }
 0x2ed   : > { %v2405_v39 = vcombine.high %v2389_v36, %v2389_v36  ;;  %v2604_v22 = vcombine.low %v2596_v63, %v2603_v13  ;;  %v2408_v21 = vcombine.high %v2304_v34, %v2304_v34  ;;  %v2667_v18 = vcombine.low %v2389_v36, %v2403_v23 }
 0x2ee   : > { %2724 = vrot.lane.b32.xlu1 %v4678_v3, %s3759_s9  ;;  %v2565_v4 = vrot.slane %v2558_v19, %v4542_v27  ;;  %v2636_v20 = vcombine.low %v2628_v16, %v2635_v60  ;;  %v2356_v32 = vcombine.high %v2340_v42, %v2340_v42  ;;  %v2358_v30 = vcombine.high %v2354_v41, %v2354_v41  ;;  %v2997_v19 = vld [vmem:[%s4921_s3 + $0x28] sm:$0xff] }
 0x2ef   : > { %v3451_v17 = vcombine.high %v2340_v42, %v2354_v41  ;;  %v2431_v8 = vrot.slane %v2415_v61, %v4542_v27  ;;  %v4694_v9 = vrot.slane %v2423_v25, %v4542_v27  ;;  %v2674_v55 = vrot.slane %v2667_v18, %v4542_v27 }
 0x2f0   : > { %2612 = vrot.lane.b32.xlu0 %v2565_v4, %s3760_s10  ;;  %v2681_v12 = vrot.slane %v2405_v39, %v4542_v27  ;;  %v2611_v38 = vrot.slane %v2604_v22, %v4542_v27  ;;  %v2494_v6 = vcombine.low %v2354_v41, %v2356_v32  ;;  %v2644_v53 = vcombine.low %v2358_v30, %v4644_v51  ;;  %v2996_v41 = vld [vmem:[%s4921_s3 + $0x20] sm:$0xff] }
 0x2f1   : > { %v2573_v31 = vrot.slane %v3451_v17, %v4542_v27  ;;  %v2422_v46 = vrot.slane %v2408_v21, %v4542_v27  ;;  %v2643_v24 = vrot.slane %v2636_v20, %v4542_v27  ;;  %v2407_v1 = vcombine.high %v2403_v23, %v2403_v23 }
 0x2f2   : > { %2818 = vrot.lane.b32.xlu1 %v4678_v3, %s3761_s11  ;;  %v2682_v43 = vcombine.low %v2674_v55, %v2681_v12  ;;  %v2651_v35 = vrot.slane %v2644_v53, %v4542_v27  ;;  %v2658_v57 = vrot.slane %v4648_v54, %v4542_v27  ;;  %v2713_v51 = vrot.slane %v4694_v9, %v4542_v27 }
 0x2f3   : > { %v2581_v11 = vcombine.low %v2573_v31, %v2580_v40  ;;  %v2699_v44 = vcombine.low %v2407_v1, %v2431_v8  ;;  %v2501_v36 = vrot.slane %v2494_v6, %v4542_v27  ;;  %v2508_v50 = vrot.slane %v2358_v30, %v4542_v27  ;;  %v3000_v1 = vld [vmem:[%s4921_s3 + $0x40] sm:$0xff] }
 0x2f4   : > { %2616 = vrot.lane.b32.xlu0 %v2611_v38, %s3760_s10  ;;  %v2659_v26 = vcombine.low %v2651_v35, %v2658_v57  ;;  %v2424_v62 = vcombine.high %v2422_v46, %v2422_v46  ;;  %v4715_v0 = vrot.slane %v2682_v43, %v4542_v27  ;;  %v2463_v54 = vrot.slane %v4668_v7, %v4542_v27  ;;  %v2999_v43 = vld [vmem:[%s4921_s3 + $0x38] sm:$0xff]  ;;  %v3001_v35 = vld [vmem:[%s4921_s3 + $0x48] sm:$0xff] }
 0x2f5   : > { %v2706_v37 = vrot.slane %v2699_v44, %v4542_v27  ;;  %v2509_v2 = vcombine.low %v2501_v36, %v2508_v50  ;;  %v2731_v10 = vcombine.low %v2431_v8, %v4694_v9  ;;  %v2478_v33 = vrot.slane %v2471_v45, %v4542_v27  ;;  %v3002_v50 = vld [vmem:[%s4921_s3 + $0x50] sm:$0xff] }
 0x2f6   : > { %2690 = vrot.lane.b32.xlu1 %v2643_v24, %s3762_s12  ;;  %v2452_v23 = vrot.slane %v2424_v62, %v4542_v27  ;;  %v2485_v7 = vrot.slane %v4655_v59, %v4542_v27  ;;  %v2470_v47 = vrot.slane %v2463_v54, %v4542_v27  ;;  %v2438_v58 = vrot.slane %v2422_v46, %v4542_v27  ;;  %v2998_v24 = vld [vmem:[%s4921_s3 + $0x30] sm:$0xff]  ;;  %v3004_v62 = vld [vmem:[%s4921_s3 + $0x60] sm:$0xff]  ;;  %v3005_v54 = vld [vmem:[%s4921_s3 + $0x68] sm:$0xff] }
 0x2f7   : > { %v2714_v28 = vcombine.low %v2706_v37, %v2713_v51  ;;  %v2453_v45 = vcombine.high %v2431_v8, %v2431_v8  ;;  %v3765_v42 = vmov 0.0|0.0   ;;  %v3647_v34 = vpack.c.bf16 %v2993_v14, %v2992_v56  ;;  %v3008_v56 = vld [vmem:[%s4921_s3 + $0x80] sm:$0xff]  ;;  %v3009_v14 = vld [vmem:[%s4921_s3 + $0x88] sm:$0xff] }
 0x2f8   : > { %2756 = vrot.lane.b32.xlu0 %v2611_v38, %s3763_s13  ;;  %v4748_v59 = vcombine.low %v2478_v33, %v2485_v7  ;;  %3646 = vmatprep.subr.bf16.mxu1 %v3765_v42  ;;  %v4752_v52 = vrot.slane %v2509_v2, %v4542_v27  ;;  %v2738_v5 = vrot.slane %v2731_v10, %v4542_v27  ;;  %v3006_v2 = vld [vmem:[%s4921_s3 + $0x70] sm:$0xff]  ;;  %v3007_v10 = vld [vmem:[%s4921_s3 + $0x78] sm:$0xff]  ;;  %v3766_v7 = vmov 0.0  }
 0x2f9   : > { %v2588_v61 = vrot.slane %v2581_v11, %v4542_v27  ;;  %v2795_v48 = vcombine.low %v2438_v58, %v2452_v23  ;;  %3648 = vmatpush1.bf16.msra.mxu1 %v3647_v34  ;;  %v3650_v63 = vpack.c.bf16 %v2995_v15, %v2994_v49  ;;  %v3453_v29 = vcombine.high %v2438_v58, %v2452_v23 }
 0x2fa   : > { %2694 = vrot.lane.b32.xlu1 %v4715_v0, %s3762_s12  ;;  %3649 = vmatprep.subr.bf16.mxu1 %v3765_v42  ;;  %v2873_v13 = vrot.slane %v2470_v47, %v4542_v27  ;;  %v2745_v25 = vrot.slane %v2453_v45, %v4542_v27  ;;  %v2454_v16 = vcombine.high %v2438_v58, %v2438_v58  ;;  %v3010_v47 = vld [vmem:[%s4921_s3 + $0x90] sm:$0x1] }
 0x2fb   : > { %v2866_v60 = vrot.slane %v3453_v29, %v4542_v27  ;;  %v2666_v39 = vrot.slane %v2659_v26, %v4542_v27  ;;  %v2802_v22 = vrot.slane %v2795_v48, %v4542_v27  ;;  %v3653_v21 = vpack.c.bf16 %v2997_v19, %v2996_v41  ;;  %v3003_v26 = vld [vmem:[%s4921_s3 + $0x58] sm:$0xff] }
 0x2fc   : > { %2850 = vrot.lane.b32.xlu0 %v2611_v38, %s3764_s19  ;;  %v2746_v4 = vcombine.low %v2738_v5, %v2745_v25  ;;  %v2809_v18 = vrot.slane %v2454_v16, %v4542_v27  ;;  %v2455_v32 = vcombine.high %v4694_v9, %v4694_v9  ;;  %v2763_v30 = vcombine.low %v4694_v9, %v2453_v45 }
 0x2fd   : > { %3651 = vmatpush1.bf16.msra.mxu1 %v3650_v63  ;;  %v4771_v20 = vcombine.low %v2866_v60, %v2873_v13  ;;  %v2721_v55 = vrot.slane %v2714_v28, %v4542_v27  ;;  %v2456_v38 = vcombine.high %v2452_v23, %v2452_v23  ;;  %v2827_v6 = vcombine.low %v2452_v23, %v2454_v16 }
 0x2fe   : > { %2788 = vrot.lane.b32.xlu1 %v4715_v0, %s3756_s27  ;;  %3652 = vmatprep.subr.bf16.mxu1 %v3765_v42  ;;  %v2753_v17 = vrot.slane %v2746_v4, %v4542_v27  ;;  %v2810_v40 = vcombine.low %v2802_v22, %v2809_v18  ;;  %v2777_v8 = vrot.slane %v2455_v32, %v4542_v27 }
 0x2ff   : > { %v2770_v12 = vrot.slane %v2763_v30, %v4542_v27  ;;  %v2834_v53 = vrot.slane %v2827_v6, %v4542_v27  ;;  %v2841_v46 = vrot.slane %v2456_v38, %v4542_v27  ;;  %v3656_v11 = vpack.c.bf16 %v2999_v43, %v2998_v24 }
 0x300   : > { %2722 = vrot.lane.b32.xlu0 %v4752_v52, %s3759_s9  ;;  %v2817_v9 = vrot.slane %v2810_v40, %v4542_v27  ;;  %v3659_v51 = vpack.c.bf16 %v3001_v35, %v3000_v1  ;;  %v3662_v37 = vpack.c.bf16 %v3003_v26, %v3002_v50  ;;  %v3665_v28 = vpack.c.bf16 %v3005_v54, %v3004_v62 }
 0x301   : > { %3654 = vmatpush1.bf16.msra.mxu1 %v3653_v21  ;;  %v2778_v31 = vcombine.low %v2770_v12, %v2777_v8  ;;  %v2842_v44 = vcombine.low %v2834_v53, %v2841_v46  ;;  %v3668_v33 = vpack.c.bf16 %v3007_v10, %v3006_v2  ;;  %v3671_v23 = vpack.c.bf16 %v3009_v14, %v3008_v56 }
 0x302   : > { %2614 = vrot.lane.b32.xlu1 %v2588_v61, %s3760_s10  ;;  %3655 = vmatprep.subr.bf16.mxu1 %v3765_v42  ;;  %v2493_v41 = vrot.slane %v4748_v59, %v4542_v27  ;;  %v2881_v62 = vrot.slane %v4771_v20, %v4542_v27 }
 0x303   : > { %v4807_v57 = vrot.slane %v2778_v31, %v4542_v27  ;;  %v2849_v36 = vrot.slane %v2842_v44, %v4542_v27 }
 0x304   : > { %2692 = vrot.lane.b32.xlu0 %v2666_v39, %s3762_s12  ;;  %v2913_v56 = vsel %vm2885_vm14, %v2881_v62, 1.0 }
 0x305   : > { %3657 = vmatpush1.bf16.msra.mxu1 %v3656_v11  ;;  %v2912_v1 = vsel %vm2885_vm14, %v4807_v57, 1.0 }
 0x306   : > { %2754 = vrot.lane.b32.xlu1 %v2588_v61, %s3763_s13  ;;  %3658 = vmatprep.subr.bf16.mxu1 %v3765_v42 }
 0x308   : > { %2786 = vrot.lane.b32.xlu0 %v2666_v39, %s3756_s27 }
 0x309   : > { %3660 = vmatpush1.bf16.msra.mxu1 %v3659_v51 }
 0x30a   : > { %2758 = vrot.lane.b32.xlu1 %v2753_v17, %s3763_s13  ;;  %3661 = vmatprep.subr.bf16.mxu1 %v3765_v42 }
 0x30c   : > { %2726 = vrot.lane.b32.xlu0 %v2721_v55, %s3759_s9 }
 0x30d   : > { %3663 = vmatpush1.bf16.msra.mxu1 %v3662_v37 }
 0x30e   : > { %2822 = vrot.lane.b32.xlu1 %v2817_v9, %s3761_s11  ;;  %3664 = vmatprep.subr.bf16.mxu1 %v3765_v42 }
 0x310   : > { %2820 = vrot.lane.b32.xlu0 %v2721_v55, %s3761_s11 }
 0x311   : > { %3666 = vmatpush1.bf16.msra.mxu1 %v3665_v28 }
 0x312   : > { %2852 = vrot.lane.b32.xlu1 %v2753_v17, %s3764_s19  ;;  %3667 = vmatprep.subr.bf16.mxu1 %v3765_v42  ;;  %v2911_v17 = vsel %vm2885_vm14, %v4715_v0, 1.0 }
 0x314   : > { %2790 = vrot.lane.b32.xlu0 %v4807_v57, %s3756_s27 }
 0x315   : > { %3669 = vmatpush1.bf16.msra.mxu1 %v3668_v33 }
 0x316   : > { %3670 = vmatprep.subr.bf16.mxu1 %v3765_v42 }
 0x318   : > { %2854 = vrot.lane.b32.xlu0 %v2849_v36, %s3764_s19 }
 0x319   : > { %3672 = vmatpush1.bf16.msra.mxu1 %v3671_v23 }
 0x31a   : > { %3146 = vmatprep.subr.mxu1 %v3766_v7 }
 0x31d   : > { %3454 = vmatpush1.msk.msra.mxu1 %vm3106_vm13, %v3010_v47 }
 0x31e   : > { %3673 = vmatprep.subr.bf16.mxu1 %v3765_v42 }
 0x360   : > { %v2725_v58 = vpop.permute.xlu1 %2724 }
 0x362   : > { %v2613_v49 = vpop.permute.xlu0 %2612 }
 0x363   : > { %v2886_v13 = vsel %vm2885_vm14, %v2493_v41, %v2613_v49 }
 0x364   : > { %v2819_v15 = vpop.permute.xlu1 %2818 }
 0x366   : > { %v2617_v45 = vpop.permute.xlu0 %2616 }
 0x367   : > { %v2888_v6 = vsel %vm2885_vm14, %v4678_v3, %v2617_v45 }
 0x368   : > { %v2691_v34 = vpop.permute.xlu1 %2690 }
 0x369   : > { %v2889_v42 = vsel %vm303_vm0, %v2886_v13, %v2691_v34 }
 0x36a   : > { %v2757_v5 = vpop.permute.xlu0 %2756 }
 0x36c   : > { %v2695_v61 = vpop.permute.xlu1 %2694 }
 0x36d   : > { %v2891_v9 = vsel %vm303_vm0, %v2888_v6, %v2695_v61 }
 0x36e   : > { %v2851_v48 = vpop.permute.xlu0 %2850 }
 0x370   : > { %v2789_v63 = vpop.permute.xlu1 %2788 }
 0x372   : > { %v2723_v29 = vpop.permute.xlu0 %2722 }
 0x373   : > { %v2893_v60 = vsel %vm2892_vm15, %v2889_v42, %v2723_v29 }
 0x374   : > { %v2615_v19 = vpop.permute.xlu1 %2614 }
 0x375   : > { %v2887_v25 = vsel %vm2885_vm14, %v4752_v52, %v2615_v19 }
 0x376   : > { %v2693_v16 = vpop.permute.xlu0 %2692 }
 0x377   : > { %v2890_v22 = vsel %vm303_vm0, %v2887_v25, %v2693_v16 }
 0x378   : > { %v2755_v39 = vpop.permute.xlu1 %2754  ;;  %v2894_v32 = vsel %vm2892_vm15, %v2890_v22, %v2725_v58 }
 0x379   : > { %v2897_v4 = vsel %vm2896_vm1, %v2893_v60, %v2755_v39  ;;  %v2898_v12 = vsel %vm2896_vm1, %v2894_v32, %v2757_v5 }
 0x37a   : > { %v2787_v59 = vpop.permute.xlu0 %2786  ;;  %v2901_v53 = vsel %vm1810_vm2, %v2898_v12, %v2789_v63 }
 0x37b   : > { %v2900_v21 = vsel %vm1810_vm2, %v2897_v4, %v2787_v59 }
 0x37c   : > { %v2759_v18 = vpop.permute.xlu1 %2758  ;;  %v2904_v30 = vsel %vm2903_vm4, %v2900_v21, %v2819_v15 }
 0x37d   : > { %v2908_v52 = vsel %vm2907_vm5, %v2904_v30, %v2851_v48 }
 0x37e   : > { %v2727_v40 = vpop.permute.xlu0 %2726  ;;  %v2920_v8 = vcombine.low %v2908_v52, %v2911_v17  ;;  %v297_v52 = vld [vmem:[%s3851_s16 + $0xf0] sm:$0xff]  ;;  %v298_v17 = vld [vmem:[%s3851_s16 + $0xf8] sm:$0xff] }
 0x37f   : > { %v2895_v24 = vsel %vm2892_vm15, %v2891_v9, %v2727_v40  ;;  %3572 = vmatprep.mubr.msk.f32.mxu0 %vm303_vm0, %v297_v52  ;;  %v3187_v40 = vstv %s3360_s14 }
 0x380   : > { %v2823_v55 = vpop.permute.xlu1 %2822  ;;  %v2927_v38 = vrot.slane %v2920_v8, %v4542_v27  ;;  %v2899_v36 = vsel %vm2896_vm1, %v2895_v24, %v2759_v18  ;;  %3573 = vmatmul.mubr.msk.f32.gmra.mrb[30].mxu0 %vm303_vm0, %v298_v17  ;;  %v3194_v24 = vld [vmem:[%s4922_s4] sm:$0x1f] }
 0x382   : > { %v2821_v31 = vpop.permute.xlu0 %2820  ;;  %v2928_v46 = vcombine.high %v2927_v38, %v2927_v38  ;;  %v2935_v35 = vrot.slane %v2927_v38, %v4542_v27 }
 0x383   : > { %v2905_v0 = vsel %vm2903_vm4, %v2901_v53, %v2821_v31 }
 0x384   : > { %v2853_v43 = vpop.permute.xlu1 %2852  ;;  %v2942_v3 = vrot.slane %v2928_v46, %v4542_v27  ;;  %v2943_v37 = vcombine.high %v2935_v35, %v2935_v35 }
 0x385   : > { %v2909_v11 = vsel %vm2907_vm5, %v2905_v0, %v2853_v43 }
 0x386   : > { %v2944_v44 = vcombine.low %v2909_v11, %v2912_v1  ;;  %v2791_v51 = vpop.permute.xlu0 %2790  ;;  %v3011_v54 = vcombine.low %v2935_v35, %v2942_v3 }
 0x387   : > { %v2902_v26 = vsel %vm1810_vm2, %v2899_v36, %v2791_v51 }
 0x388   : > { %v2951_v50 = vrot.slane %v2944_v44, %v4542_v27  ;;  %v2906_v10 = vsel %vm2903_vm4, %v2902_v26, %v2823_v55  ;;  %v3021_v47 = vrot.slane %v3011_v54, %v4542_v27 }
 0x38a   : > { %v2959_v57 = vrot.slane %v2951_v50, %v4542_v27  ;;  %v2952_v28 = vcombine.high %v2951_v50, %v2951_v50  ;;  %v2855_v2 = vpop.permute.xlu0 %2854 }
 0x38b   : > { %v2910_v14 = vsel %vm2907_vm5, %v2906_v10, %v2855_v2 }
 0x38c   : > { %v3012_v33 = vcombine.low %v2943_v37, %v2959_v57  ;;  %v2968_v23 = vcombine.low %v2910_v14, %v2913_v56  ;;  %v2966_v20 = vrot.slane %v2952_v28, %v4542_v27  ;;  %v2967_v49 = vcombine.high %v2959_v57, %v2959_v57 }
 0x38e   : > { %v3028_v58 = vrot.slane %v3012_v33, %v4542_v27  ;;  %v2975_v15 = vrot.slane %v2968_v23, %v4542_v27  ;;  %v3013_v48 = vcombine.low %v2966_v20, %v2967_v49 }
 0x390   : > { %v3043_v45 = vcombine.low %v3021_v47, %v3028_v58  ;;  %v3044_v34 = vcombine.high %v3021_v47, %v3028_v58  ;;  %v2976_v5 = vcombine.high %v2975_v15, %v2975_v15  ;;  %v2983_v61 = vrot.slane %v2975_v15, %v4542_v27 }
 0x391   : > { %v3035_v19 = vrot.slane %v3013_v48, %v4542_v27 }
 0x392   : > { %v2990_v63 = vrot.slane %v2976_v5, %v4542_v27  ;;  %v2991_v29 = vcombine.high %v2983_v61, %v2983_v61  ;;  %v3060_v60 = vrot.slane %v3044_v34, %v4542_v27  ;;  %v3053_v4 = vrot.slane %v3043_v45, %v4542_v27 }
 0x394   : > { %v3014_v41 = vcombine.low %v2983_v61, %v2990_v63  ;;  %v3083_v42 = vrot.slane %v2991_v29, %v4542_v27 }
 0x396   : > { %v3042_v13 = vrot.slane %v3014_v41, %v4542_v27  ;;  %v3084_v59 = vcombine.high %v3083_v42, %v3083_v42  ;;  %v3091_v30 = vrot.slane %v3083_v42, %v4542_v27 }
 0x398   : > { %v3045_v25 = vcombine.low %v3035_v19, %v3042_v13  ;;  %v3046_v16 = vcombine.high %v3035_v19, %v3042_v13  ;;  %v3098_v32 = vrot.slane %v3084_v59, %v4542_v27 }
 0x39a   : > { %v3074_v39 = vrot.slane %v3046_v16, %v4542_v27  ;;  %v3067_v22 = vrot.slane %v3045_v25, %v4542_v27 }
 0x39c   : > { %v3076_v21 = vcombine.low %v3060_v60, %v3074_v39  ;;  %v3075_v18 = vcombine.low %v3053_v4, %v3067_v22 }
 0x39e   : > { %3455 = vmatprep.mubr.msk.f32.mxu1 %vm3101_vm7, %v3076_v21 }
 0x39f   : > { %3175 = vmatmul.mubr.f32.vlgmr.msra.gmra.mrb[4].mxu1 %v3075_v18 }
 0x3a0   : > { %3456 = vmatprep.mubr.msk.f32.mxu1 %vm3101_vm7, %v3098_v32 }
 0x3a3   : > { %3180 = vmatmul.mubr.f32.gmra.mrb[6].mxu1 %v3091_v30 }
 0x3a4   : > { %3609 = vmatprep.mubr.msk.f32.mxu1 %vm3767_vm8, %v3766_v7 }
 0x453   : > { %v3574_v0 = vpop.f32.mrb[30].mxu0 }
 0x454   : > { %v616_v43 = vpop.f32.mrb[31].mxu0 }
 0x472   : > { %v3176_v8 = vpop.f32.mrb[4].mxu1 }
 0x473   : > { %v3188_v55 = vmul.f32 %v3187_v40, %v3176_v8  ;;  %v3178_v12 = vpop.f32.mrb[5].mxu1  ;;  %vm3185_vm2 = vcmp.ge.f32.partialorder %v3176_v8, 0.0 }
 0x475   : > { %v3190_v6 = vsel %vm3185_vm2, %v3176_v8, %v3188_v55 }
 0x476   : > { %v3181_v38 = vpop.f32.mrb[6].mxu1  ;;  %v3192_v7 = vsel %vm303_vm0, %v3190_v6, 1.0 }
 0x477   : > { %vm3186_vm3 = vcmp.ge.f32.partialorder %v3181_v38, 0.0  ;;  %v3189_v27 = vmul.f32 %v3187_v40, %v3181_v38  ;;  %v3183_v9 = vpop.f32.mrb[7].mxu1 }
 0x479   : > { %v3191_v31 = vsel %vm3186_vm3, %v3181_v38, %v3189_v27 }
 0x47a   : > { %v3193_v53 = vsel %vm303_vm0, %v3191_v31, 1.0  ;;  %vm3282_vm0 = vcmask 69632  }
 0x47b   : > { %v3674_v46 = vpack.c.bf16 %v3193_v53, %v3192_v7 }
 0x47d   : > { %3676 = vmatpush3.bf16.xpose.msk.msra.mxu1 %vm3675_vm10, %v3674_v46 }
 0x484   : > { %3610 = vmatmul.mubr.msk.f32.vlgmr.msra.gmra.mrb[8].mxu1 %vm3195_vm6, %v3194_v24 }
 0x557   : > { %v3271_v1 = vpop.f32.mrb[8].mxu1 }
 0x558   : > { %v3460_v11 = vmul.f32 -1.442695, %v3271_v1  ;;  %v3611_v35 = vpop.f32.mrb[9].mxu1 }
 0x55a   : > { %3716 = vpow2.f32 %v3460_v11 }
 0x564   : > { %v3717_v3 = vpop.eup %3716 }
 0x565   : > { %v3278_v44 = vadd.f32 1.0, %v3717_v3 }
 0x567   : > { %3718 = vrcp.f32 %v3278_v44 }
 0x571   : > { %v3719_v51 = vpop.eup %3718 }
 0x572   : > { %v3281_v36 = vsel %vm3106_vm13, %v3719_v51, %v3271_v1 }
 0x573   : > { %3283 = vst.msk [vmem:[%s263_s18] sm:$0x1f] %vm3282_vm0, %v3281_v36 }
 0x574 PF: > { %s17_s21 = sadd.s32 1, %s3745_s21  }
 0x575   : > { %p14_p1 = scmp.ge.s32.totalorder %s17_s21, 4  }
 0x577   :  { %16 = sbr.rel (!%p14_p1) target bundleno = 1 (0x1), region = 79 }
 0x57e   :  { %3303 = vsyncpa [#allocation3], 1 }
 0x57f   :  { %3305 = vsyncpa [#allocation3 + $0x1], 1 }

</bundles_post_ra>
